<compile_context>
chip_gen: v5e
topology: v5e:2x2
jax: 0.10.0
libtpu: 0.0.40
codegen_flags: <defaults>
</compile_context>

<pallas_src>
import math

import jax
import jax.numpy as jnp
from jax.experimental import pallas as pl
from jax.experimental.pallas import tpu as pltpu


def mlp_kernel(x_ref, w0_ref, w1_ref, w2_ref, wc_ref, b_ref, o_ref):
    """Fused MLP forward for one batch tile.

    x_ref:  (tb, D)  f32  — batch-major input tile, cast to bf16 in-kernel
    w*_ref: (out, in) bf16 — BN + bias folded
    wc_ref: (K, C)   f32  — classifier weight, transposed
    b_ref:  (H0+H1+H2+C, 1) f32 — all folded biases concatenated
    o_ref:  (C, tb)  f32  — lane-dense output (batch on the lane axis)
    """
    h0 = w0_ref.shape[0]
    h1 = w1_ref.shape[0]
    h2 = w2_ref.shape[0]
    c = wc_ref.shape[1]
    o1, o2, oc = h0, h0 + h1, h0 + h1 + h2   # static bias offsets

    # In-kernel cast of the input tile to bf16 (VPU), then MXU contraction of
    # the feature dim of both operands -> (h0, tb) with batch on the lanes.
    x_bf16 = x_ref[...].astype(jnp.bfloat16)                       # (tb, D)
    z = jax.lax.dot_general(
        w0_ref[...], x_bf16,
        dimension_numbers=(((1,), (1,)), ((), ())),
        preferred_element_type=jnp.float32)                        # (h0, tb)
    h = jnp.maximum(z + b_ref[0:o1, :], 0.0).astype(jnp.bfloat16)

    def block(h_bf16, w_ref, b_col):
        zz = jnp.dot(w_ref[...], h_bf16, preferred_element_type=jnp.float32)
        return jnp.maximum(zz + b_col, 0.0).astype(jnp.bfloat16)

    h = block(h, w1_ref, b_ref[o1:o2, :])                          # (h1, tb)
    h = block(h, w2_ref, b_ref[o2:oc, :])                          # (h2, tb)

    hf = h.astype(jnp.float32)
    if c == 1:
        # Tiny K x 1 classifier: VPU broadcast-multiply + sublane reduce
        # (avoids an MXU push/pop for a <1%-utilization matmul), landing
        # directly in the lane-dense (1, tb) layout.
        logits = jnp.sum(wc_ref[...] * hf, axis=0, keepdims=True)  # (1, tb)
    else:
        logits = jax.lax.dot_general(
            wc_ref[...], hf,
            dimension_numbers=(((0,), (0,)), ((), ())),
            preferred_element_type=jnp.float32)                    # (C, tb)

    o_ref[...] = logits + b_ref[oc:oc + c, :]


def _num_tensorcores():
    """Best-effort detection of TensorCores per chip (v7x has 2)."""
    try:
        kind = jax.devices()[0].device_kind.lower()
    except Exception:  # pragma: no cover - defensive
        return 1
    return 2 if "v7" in kind else 1


def simple_mlp_forward(x, params, *, batch_tile=None):
    """x: (B, D) f32. params = [(W', b') x 3, (WcT, bc)] from make_params.

    Returns (B, num_classes) f32.
    """
    B, D = x.shape
    (w0, b0), (w1, b1), (w2, b2), (wc_t, bc) = params
    C = wc_t.shape[1]

    # Per-generation batch tile: grid=1 on single-TC chips (v5e/v6e),
    # grid=2 "parallel" on dual-TC v7x.
    if batch_tile is None:
        n_tc = _num_tensorcores()
        tb = B // n_tc if (B % n_tc == 0 and (B // n_tc) % 128 == 0) else B
    else:
        tb = min(batch_tile, B)
    assert tb % 128 == 0, "batch tile must be a multiple of 128 (lane-dense output)"
    assert B % tb == 0, "batch must be a multiple of the batch tile"

    # bf16 MXU feeds for hidden-layer weights; single concatenated bias column.
    w0b = w0.astype(jnp.bfloat16)
    w1b = w1.astype(jnp.bfloat16)
    w2b = w2.astype(jnp.bfloat16)
    b_all = jnp.concatenate([b0, b1, b2, bc], axis=0)               # (sum_out, 1)

    flat_params = [w0b, w1b, w2b, wc_t, b_all]

    def full_spec(arr):
        return pl.BlockSpec(arr.shape, lambda i: (0, 0))

    in_specs = ([pl.BlockSpec((tb, D), lambda i: (i, 0))]
                + [full_spec(p) for p in flat_params])
    out_spec = pl.BlockSpec((C, tb), lambda i: (0, i))

    h0, h1, h2 = w0.shape[0], w1.shape[0], w2.shape[0]
    flops = 2 * B * (D * h0 + w1.shape[1] * h1 + w2.shape[1] * h2 + h2 * C)
    weight_bytes = sum(int(p.size) * p.dtype.itemsize for p in flat_params)
    cost = pl.CostEstimate(
        flops=flops,
        bytes_accessed=B * D * 4 + B * C * 4 + weight_bytes,
        transcendentals=0)

    out_t = pl.pallas_call(
        mlp_kernel,
        out_shape=jax.ShapeDtypeStruct((C, B), jnp.float32),
        grid_spec=pltpu.PrefetchScalarGridSpec(
            num_scalar_prefetch=0,
            grid=(B // tb,),
            in_specs=in_specs,
            out_specs=out_spec,
        ),
        compiler_params=pltpu.CompilerParams(
            dimension_semantics=("parallel",)),
        cost_estimate=cost,
    )(x, *flat_params)

    if C == 1:
        return out_t.reshape(B, 1)        # free relayout of the (1, B) slab
    return out_t.T                        # C > 1: consumer-facing (B, C)


def make_params(key, input_dim, hidden_dims, num_classes,
                neg_weight=0.2, pos_weight=0.8, bn_eps=1e-5):
    """Deterministic init matching the PyTorch module, with BN/bias pre-folded.

    Returns [(W'_i (out,in), b'_i (out,1)) x 3, (Wc^T (K,C), bc (C,1))].
    """
    # Linear in/out dims exactly as built by the (quirky) PyTorch __init__:
    lin_dims = [(input_dim, hidden_dims[0]),
                (input_dim, hidden_dims[1]),   # prev_dim bug preserved
                (hidden_dims[1], hidden_dims[2])]

    keys = jax.random.split(key, len(lin_dims) + 1)
    bn_scale = 1.0 / math.sqrt(1.0 + bn_eps)   # gamma=1, beta=0, mean=0, var=1
    params = []
    for (fan_in, fan_out), k in zip(lin_dims, keys[:-1]):
        std = math.sqrt(2.0 / fan_in)          # kaiming_normal_, fan_in, relu
        w = jax.random.normal(k, (fan_out, fan_in), jnp.float32) * std
        b = jnp.zeros((fan_out,), jnp.float32)
        # Fold eval-mode BN and bias:  W' = s*W,  b' = s*b + shift(=0)
        w_folded = w * bn_scale
        b_folded = (b * bn_scale).reshape(fan_out, 1)
        params.append((w_folded, b_folded))

    fan_in = hidden_dims[-1]
    std = math.sqrt(2.0 / fan_in)
    wc = jax.random.normal(keys[-1], (num_classes, fan_in), jnp.float32) * std
    wc_t = wc.T                                           # (K, C)
    bc = jnp.full((num_classes, 1),
                  math.log(pos_weight / neg_weight), jnp.float32)
    params.append((wc_t, bc))
    return params


def reference_forward(x, params):
    """Plain-JAX reference reproducing the kernel's bf16-rounded matmul inputs."""
    (w0, b0), (w1, b1), (w2, b2), (wc_t, bc) = params

    def rnd(a):  # bf16 rounding of MXU operands, accumulate in f32
        return a.astype(jnp.bfloat16).astype(jnp.float32)

    h = rnd(x)
    for w, b in [(w0, b0), (w1, b1), (w2, b2)]:
        z = h @ rnd(w).T + b.reshape(1, -1)
        h = rnd(jnp.maximum(z, 0.0))
    return h @ wc_t + bc.reshape(1, -1)


if __name__ == "__main__":
    # input_dim must equal hidden_dims[0] (prev_dim quirk, see header).
    hidden_dims = [32, 16, 8]
    input_dim = hidden_dims[0]
    num_classes = 1
    batch = 2048

    key = jax.random.PRNGKey(0)
    kx, kp = jax.random.split(key)
    x = jax.random.normal(kx, (batch, input_dim), jnp.float32)
    params = make_params(kp, input_dim, hidden_dims, num_classes)

    out = simple_mlp_forward(x, params)        # batch_tile auto-selected per chip
    out = jax.block_until_ready(out)

    ref = reference_forward(x, params)
    assert out.shape == (batch, num_classes)
    assert jnp.allclose(out, ref, rtol=1e-4, atol=1e-4), "mismatch vs JAX reference"

    print("KERNEL_OK")
</pallas_src>

<mosaic_0001>
module attributes {stable_mosaic.version = 11 : i64} {
  func.func @mlp_kernel(%arg0: i32, %arg1: memref<2048x32xf32, #tpu.memory_space<vmem>>, %arg2: memref<32x32xbf16, #tpu.memory_space<vmem>>, %arg3: memref<16x32xbf16, #tpu.memory_space<vmem>>, %arg4: memref<8x16xbf16, #tpu.memory_space<vmem>>, %arg5: memref<8x1xf32, #tpu.memory_space<vmem>>, %arg6: memref<57x1xf32, #tpu.memory_space<vmem>>, %arg7: memref<1x2048xf32, #tpu.memory_space<vmem>>) attributes {dimension_semantics = [#tpu.dimension_semantics<parallel>], iteration_bounds = array<i64: 1>, scalar_prefetch = 0 : i64, scratch_operands = 0 : i64, tpu.core_type = #tpu.core_type<tc>, window_params = [{transform_indices = @transform_0, window_bounds = array<i64: 2048, 32>}, {pipeline_mode = #tpu.pipeline_mode<synchronous>, transform_indices = @transform_1, window_bounds = array<i64: 32, 32>}, {pipeline_mode = #tpu.pipeline_mode<synchronous>, transform_indices = @transform_2, window_bounds = array<i64: 16, 32>}, {pipeline_mode = #tpu.pipeline_mode<synchronous>, transform_indices = @transform_3, window_bounds = array<i64: 8, 16>}, {pipeline_mode = #tpu.pipeline_mode<synchronous>, transform_indices = @transform_4, window_bounds = array<i64: 8, 1>}, {pipeline_mode = #tpu.pipeline_mode<synchronous>, transform_indices = @transform_5, window_bounds = array<i64: 57, 1>}, {transform_indices = @transform_6, window_bounds = array<i64: 1, 2048>}]} {
    %c0 = arith.constant 0 : index
    %c0_0 = arith.constant 0 : index
    %0 = vector.load %arg1[%c0, %c0_0] : memref<2048x32xf32, #tpu.memory_space<vmem>>, vector<2048x32xf32>
    %1 = arith.truncf %0 : vector<2048x32xf32> to vector<2048x32xbf16>
    %c0_1 = arith.constant 0 : index
    %c0_2 = arith.constant 0 : index
    %2 = vector.load %arg2[%c0_1, %c0_2] : memref<32x32xbf16, #tpu.memory_space<vmem>>, vector<32x32xbf16>
    %cst = arith.constant dense<0.000000e+00> : vector<32x2048xf32>
    %3 = tpu.matmul %2, %1, %cst {dimension_numbers = #tpu.dot_dimension_numbers<[1], [1], [0], [0], [0, 0, 1, 0], [], []>} : vector<32x32xbf16>, vector<2048x32xbf16>, vector<32x2048xf32> -> vector<32x2048xf32>
    %c0_3 = arith.constant 0 : index
    %c0_4 = arith.constant 0 : index
    %4 = vector.load %arg6[%c0_3, %c0_4] : memref<57x1xf32, #tpu.memory_space<vmem>>, vector<32x1xf32>
    %5 = vector.broadcast %4 : vector<32x1xf32> to vector<32x2048xf32>
    %6 = arith.addf %3, %5 : vector<32x2048xf32>
    %cst_5 = arith.constant 0.000000e+00 : f32
    %7 = vector.broadcast %cst_5 : f32 to vector<32x2048xf32>
    %8 = arith.maximumf %6, %7 : vector<32x2048xf32>
    %9 = arith.truncf %8 : vector<32x2048xf32> to vector<32x2048xbf16>
    %c32 = arith.constant 32 : index
    %c0_6 = arith.constant 0 : index
    %10 = vector.load %arg6[%c32, %c0_6] : memref<57x1xf32, #tpu.memory_space<vmem>>, vector<16x1xf32>
    %c0_7 = arith.constant 0 : index
    %c0_8 = arith.constant 0 : index
    %11 = vector.load %arg3[%c0_7, %c0_8] : memref<16x32xbf16, #tpu.memory_space<vmem>>, vector<16x32xbf16>
    %cst_9 = arith.constant dense<0.000000e+00> : vector<16x2048xf32>
    %12 = tpu.matmul %11, %9, %cst_9 {dimension_numbers = #tpu.dot_dimension_numbers<[1], [0], [0], [1], [0, 0, 1, 1], [], []>} : vector<16x32xbf16>, vector<32x2048xbf16>, vector<16x2048xf32> -> vector<16x2048xf32>
    %13 = vector.broadcast %10 : vector<16x1xf32> to vector<16x2048xf32>
    %14 = arith.addf %12, %13 : vector<16x2048xf32>
    %cst_10 = arith.constant 0.000000e+00 : f32
    %15 = vector.broadcast %cst_10 : f32 to vector<16x2048xf32>
    %16 = arith.maximumf %14, %15 : vector<16x2048xf32>
    %17 = arith.truncf %16 : vector<16x2048xf32> to vector<16x2048xbf16>
    %c48 = arith.constant 48 : index
    %c0_11 = arith.constant 0 : index
    %18 = vector.load %arg6[%c48, %c0_11] : memref<57x1xf32, #tpu.memory_space<vmem>>, vector<8x1xf32>
    %c0_12 = arith.constant 0 : index
    %c0_13 = arith.constant 0 : index
    %19 = vector.load %arg4[%c0_12, %c0_13] : memref<8x16xbf16, #tpu.memory_space<vmem>>, vector<8x16xbf16>
    %cst_14 = arith.constant dense<0.000000e+00> : vector<8x2048xf32>
    %20 = tpu.matmul %19, %17, %cst_14 {dimension_numbers = #tpu.dot_dimension_numbers<[1], [0], [0], [1], [0, 0, 1, 1], [], []>} : vector<8x16xbf16>, vector<16x2048xbf16>, vector<8x2048xf32> -> vector<8x2048xf32>
    %21 = vector.broadcast %18 : vector<8x1xf32> to vector<8x2048xf32>
    %22 = arith.addf %20, %21 : vector<8x2048xf32>
    %cst_15 = arith.constant 0.000000e+00 : f32
    %23 = vector.broadcast %cst_15 : f32 to vector<8x2048xf32>
    %24 = arith.maximumf %22, %23 : vector<8x2048xf32>
    %25 = arith.truncf %24 : vector<8x2048xf32> to vector<8x2048xbf16>
    %26 = arith.extf %25 : vector<8x2048xbf16> to vector<8x2048xf32>
    %c0_16 = arith.constant 0 : index
    %c0_17 = arith.constant 0 : index
    %27 = vector.load %arg5[%c0_16, %c0_17] : memref<8x1xf32, #tpu.memory_space<vmem>>, vector<8x1xf32>
    %28 = vector.broadcast %27 : vector<8x1xf32> to vector<8x2048xf32>
    %29 = arith.mulf %28, %26 : vector<8x2048xf32>
    %cst_18 = arith.constant dense<0.000000e+00> : vector<2048xf32>
    %30 = vector.multi_reduction <add>, %29, %cst_18 [0] : vector<8x2048xf32> to vector<2048xf32>
    %31 = vector.shape_cast %30 : vector<2048xf32> to vector<1x2048xf32>
    %c56 = arith.constant 56 : index
    %c0_19 = arith.constant 0 : index
    %32 = vector.load %arg6[%c56, %c0_19] : memref<57x1xf32, #tpu.memory_space<vmem>>, vector<1x1xf32>
    %33 = vector.broadcast %32 : vector<1x1xf32> to vector<1x2048xf32>
    %34 = arith.addf %31, %33 : vector<1x2048xf32>
    %c0_20 = arith.constant 0 : index
    %c0_21 = arith.constant 0 : index
    %35 = vector.load %arg7[%c0_20, %c0_21] : memref<1x2048xf32, #tpu.memory_space<vmem>>, vector<1x2048xf32>
    tpu.vector_store %arg7[%c0_20, %c0_21], %34 {strides = array<i32>} : memref<1x2048xf32, #tpu.memory_space<vmem>>, vector<1x2048xf32>,
    return
  }
  func.func @transform_0(%arg0: i32) -> (i32, i32) {
    %c0_i32 = arith.constant 0 : i32
    %c0_i32_0 = arith.constant 0 : i32
    return %arg0, %c0_i32 : i32, i32
  }
  func.func @transform_1(%arg0: i32) -> (i32, i32) {
    %c0_i32 = arith.constant 0 : i32
    %c0_i32_0 = arith.constant 0 : i32
    %c0_i32_1 = arith.constant 0 : i32
    return %c0_i32, %c0_i32_0 : i32, i32
  }
  func.func @transform_2(%arg0: i32) -> (i32, i32) {
    %c0_i32 = arith.constant 0 : i32
    %c0_i32_0 = arith.constant 0 : i32
    %c0_i32_1 = arith.constant 0 : i32
    return %c0_i32, %c0_i32_0 : i32, i32
  }
  func.func @transform_3(%arg0: i32) -> (i32, i32) {
    %c0_i32 = arith.constant 0 : i32
    %c0_i32_0 = arith.constant 0 : i32
    %c0_i32_1 = arith.constant 0 : i32
    return %c0_i32, %c0_i32_0 : i32, i32
  }
  func.func @transform_4(%arg0: i32) -> (i32, i32) {
    %c0_i32 = arith.constant 0 : i32
    %c0_i32_0 = arith.constant 0 : i32
    %c0_i32_1 = arith.constant 0 : i32
    return %c0_i32, %c0_i32_0 : i32, i32
  }
  func.func @transform_5(%arg0: i32) -> (i32, i32) {
    %c0_i32 = arith.constant 0 : i32
    %c0_i32_0 = arith.constant 0 : i32
    %c0_i32_1 = arith.constant 0 : i32
    return %c0_i32, %c0_i32_0 : i32, i32
  }
  func.func @transform_6(%arg0: i32) -> (i32, i32) {
    %c0_i32 = arith.constant 0 : i32
    %c0_i32_0 = arith.constant 0 : i32
    return %c0_i32, %arg0 : i32, i32
  }
}

</mosaic_0001>

<bundles_post_ra>
// kernel: tpu_custom_call.1
= control target key start
LH: loop header
LB: loop body
LE: loop exit
PB: predicated region body
PF: predicated region fallthrough
CT: control target
= control target key end

     0   :  { %vm447_vm0 = vcmask 261120   ;;  %s3423_s0 = inlined_call_operand.vmem [shape: f32[2048,32], index: 0, kind: input, shape index: {}]   ;;  %s3424_s1 = inlined_call_operand.vmem [shape: bf16[32,32], index: 1, kind: input, shape index: {}]   ;;  %s3425_s2 = inlined_call_operand.vmem [shape: bf16[16,32], index: 2, kind: input, shape index: {}]   ;;  %s3426_s3 = inlined_call_operand.vmem [shape: bf16[8,16], index: 3, kind: input, shape index: {}]   ;;  %s3427_s4 = inlined_call_operand.vmem [shape: f32[8,1], index: 4, kind: input, shape index: {}]   ;;  %s3428_s5 = inlined_call_operand.vmem [shape: f32[57,1], index: 5, kind: input, shape index: {}]   ;;  %s3429_s6 = inlined_call_operand.hbm [shape: f32[1,2048], index: 6, kind: output, shape index: {}]  }
   0x1   :  { %v39_v0 = vld [vmem:[%s3423_s0 + $0x70] sm:$0xff]  ;;  %v40_v1 = vld [vmem:[%s3423_s0 + $0x78] sm:$0xff]  ;;  %v37_v11 = vld [vmem:[%s3423_s0 + $0x60] sm:$0xff] }
   0x2   :  { %v55_v2 = vld [vmem:[%s3423_s0 + $0xf0] sm:$0xff]  ;;  %v288_v3 = vpack.c.bf16 %v40_v1, %v39_v0  ;;  %v56_v4 = vld [vmem:[%s3423_s0 + $0xf8] sm:$0xff]  ;;  %v38_v14 = vld [vmem:[%s3423_s0 + $0x68] sm:$0xff] }
   0x3   :  { %v71_v5 = vld [vmem:[%s3423_s0 + $0x170] sm:$0xff]  ;;  %v72_v6 = vld [vmem:[%s3423_s0 + $0x178] sm:$0xff]  ;;  %v296_v7 = vpack.c.bf16 %v56_v4, %v55_v2  ;;  %v53_v15 = vld [vmem:[%s3423_s0 + $0xe0] sm:$0xff]  ;;  %v287_v23 = vpack.c.bf16 %v38_v14, %v37_v11 }
   0x4   :  { %v304_v8 = vpack.c.bf16 %v72_v6, %v71_v5  ;;  %v87_v9 = vld [vmem:[%s3423_s0 + $0x1f0] sm:$0xff]  ;;  %v88_v10 = vld [vmem:[%s3423_s0 + $0x1f8] sm:$0xff]  ;;  %v476_v12 = vsel %vm447_vm0, %v288_v3, 0  ;;  %v54_v16 = vld [vmem:[%s3423_s0 + $0xe8] sm:$0xff] }
   0x5   :  { %v312_v13 = vpack.c.bf16 %v88_v10, %v87_v9  ;;  %838 = vmatpush.bf16.xpose.msra.mxu0 %v476_v12  ;;  %v500_v17 = vsel %vm447_vm0, %v296_v7, 0  ;;  %v69_v19 = vld [vmem:[%s3423_s0 + $0x160] sm:$0xff]  ;;  %v70_v20 = vld [vmem:[%s3423_s0 + $0x168] sm:$0xff]  ;;  %v295_v25 = vpack.c.bf16 %v54_v16, %v53_v15  ;;  %v473_v28 = vsel %vm447_vm0, %v287_v23, 0  ;;  %v35_v31 = vld [vmem:[%s3423_s0 + $0x50] sm:$0xff] }
   0x6   :  { %v524_v18 = vsel %vm447_vm0, %v304_v8, 0  ;;  %v85_v21 = vld [vmem:[%s3423_s0 + $0x1e0] sm:$0xff]  ;;  %857 = vmatpush.bf16.xpose.msra.mxu1 %v500_v17  ;;  %v86_v24 = vld [vmem:[%s3423_s0 + $0x1e8] sm:$0xff]  ;;  %v303_v26 = vpack.c.bf16 %v70_v20, %v69_v19  ;;  %v36_v32 = vld [vmem:[%s3423_s0 + $0x58] sm:$0xff] }
   0x7   :  { %876 = vmatpush.bf16.xpose.msra.mxu2 %v524_v18  ;;  %v548_v22 = vsel %vm447_vm0, %v312_v13, 0  ;;  %v311_v27 = vpack.c.bf16 %v86_v24, %v85_v21  ;;  %v497_v29 = vsel %vm447_vm0, %v295_v25, 0  ;;  %v51_v33 = vld [vmem:[%s3423_s0 + $0xd0] sm:$0xff]  ;;  %v52_v35 = vld [vmem:[%s3423_s0 + $0xd8] sm:$0xff]  ;;  %v286_v40 = vpack.c.bf16 %v36_v32, %v35_v31 }
   0x8   :  { %895 = vmatpush.bf16.xpose.msra.mxu3 %v548_v22  ;;  %v521_v30 = vsel %vm447_vm0, %v303_v26, 0  ;;  %v67_v36 = vld [vmem:[%s3423_s0 + $0x150] sm:$0xff]  ;;  %v68_v37 = vld [vmem:[%s3423_s0 + $0x158] sm:$0xff]  ;;  %v294_v41 = vpack.c.bf16 %v52_v35, %v51_v33 }
   0x9   :  { %v545_v34 = vsel %vm447_vm0, %v311_v27, 0  ;;  %v83_v38 = vld [vmem:[%s3423_s0 + $0x1d0] sm:$0xff]  ;;  %v84_v39 = vld [vmem:[%s3423_s0 + $0x1d8] sm:$0xff]  ;;  %v302_v42 = vpack.c.bf16 %v68_v37, %v67_v36 }
   0xa   :  { %v310_v43 = vpack.c.bf16 %v84_v39, %v83_v38 }
   0xd   :  { %839 = vmatpush.bf16.xpose.msra.mxu0 %v473_v28 }
   0xe   :  { %858 = vmatpush.bf16.xpose.msra.mxu1 %v497_v29 }
   0xf   :  { %877 = vmatpush.bf16.xpose.msra.mxu2 %v521_v30 }
  0x10   :  { %896 = vmatpush.bf16.xpose.msra.mxu3 %v545_v34 }
  0x11   :  { %11 = vsyncpa [#allocation3], 0  ;;  %v470_v44 = vsel %vm447_vm0, %v286_v40, 0  ;;  %v494_v45 = vsel %vm447_vm0, %v294_v41, 0  ;;  %v518_v46 = vsel %vm447_vm0, %v302_v42, 0  ;;  %v33_v47 = vld [vmem:[%s3423_s0 + $0x40] sm:$0xff] }
  0x12   :  { %v34_v48 = vld [vmem:[%s3423_s0 + $0x48] sm:$0xff]  ;;  %v49_v49 = vld [vmem:[%s3423_s0 + $0xc0] sm:$0xff]  ;;  %v542_v50 = vsel %vm447_vm0, %v310_v43, 0  ;;  %v31_v63 = vld [vmem:[%s3423_s0 + $0x30] sm:$0xff]  ;;  %vm1539_vm1 = vcmask 130048   ;;  %vm1961_vm2 = vcmask 1040384  }
  0x13   :  { %v50_v51 = vld [vmem:[%s3423_s0 + $0xc8] sm:$0xff]  ;;  %v65_v52 = vld [vmem:[%s3423_s0 + $0x140] sm:$0xff]  ;;  %v285_v56 = vpack.c.bf16 %v34_v48, %v33_v47  ;;  %v32_v0 = vld [vmem:[%s3423_s0 + $0x38] sm:$0xff]  ;;  %vm1963_vm3 = vcmask 1042434   ;;  %vm1965_vm4 = vcmask 1041408   ;;  %vm1967_vm5 = vcmask 1044484  }
  0x14   :  { %v66_v53 = vld [vmem:[%s3423_s0 + $0x148] sm:$0xff]  ;;  %v81_v54 = vld [vmem:[%s3423_s0 + $0x1c0] sm:$0xff]  ;;  %v293_v57 = vpack.c.bf16 %v50_v51, %v49_v49  ;;  %v47_v1 = vld [vmem:[%s3423_s0 + $0xb0] sm:$0xff]  ;;  %v284_v8 = vpack.c.bf16 %v32_v0, %v31_v63  ;;  %vm1969_vm6 = vcmask 1046534   ;;  %vm1971_vm7 = vcmask 1045508   ;;  %s1993_s30 = sshll.u32 %s3429_s6, 4  ;;  %s1994_s30 = int_to_ptr.hbm [resolvable:$true] %s1993_s30 }
  0x15   :  { %840 = vmatpush.bf16.xpose.msra.mxu0 %v470_v44  ;;  %v82_v55 = vld [vmem:[%s3423_s0 + $0x1c8] sm:$0xff]  ;;  %v301_v58 = vpack.c.bf16 %v66_v53, %v65_v52  ;;  %v467_v60 = vsel %vm447_vm0, %v285_v56, 0  ;;  %v48_v3 = vld [vmem:[%s3423_s0 + $0xb8] sm:$0xff]  ;;  %v63_v4 = vld [vmem:[%s3423_s0 + $0x130] sm:$0xff]  ;;  %vm1973_vm8 = vcmask 1043456  }
  0x16   :  { %859 = vmatpush.bf16.xpose.msra.mxu1 %v494_v45  ;;  %v309_v59 = vpack.c.bf16 %v82_v55, %v81_v54  ;;  %v491_v61 = vsel %vm447_vm0, %v293_v57, 0  ;;  %v64_v5 = vld [vmem:[%s3423_s0 + $0x138] sm:$0xff]  ;;  %v79_v6 = vld [vmem:[%s3423_s0 + $0x1b0] sm:$0xff]  ;;  %v292_v9 = vpack.c.bf16 %v48_v3, %v47_v1  ;;  %v464_v12 = vsel %vm447_vm0, %v284_v8, 0  ;;  %v29_v15 = vld [vmem:[%s3423_s0 + $0x20] sm:$0xff] }
  0x17   :  { %878 = vmatpush.bf16.xpose.msra.mxu2 %v518_v46  ;;  %v515_v62 = vsel %vm447_vm0, %v301_v58, 0  ;;  %v80_v7 = vld [vmem:[%s3423_s0 + $0x1b8] sm:$0xff]  ;;  %v300_v10 = vpack.c.bf16 %v64_v5, %v63_v4  ;;  %v30_v16 = vld [vmem:[%s3423_s0 + $0x28] sm:$0xff]  ;;  %v45_v17 = vld [vmem:[%s3423_s0 + $0xa0] sm:$0xff] }
  0x18   :  { %897 = vmatpush.bf16.xpose.msra.mxu3 %v542_v50  ;;  %v539_v2 = vsel %vm447_vm0, %v309_v59, 0  ;;  %v308_v11 = vpack.c.bf16 %v80_v7, %v79_v6  ;;  %v488_v13 = vsel %vm447_vm0, %v292_v9, 0  ;;  %v46_v19 = vld [vmem:[%s3423_s0 + $0xa8] sm:$0xff]  ;;  %v61_v20 = vld [vmem:[%s3423_s0 + $0x120] sm:$0xff]  ;;  %v283_v24 = vpack.c.bf16 %v30_v16, %v29_v15  ;;  %v27_v31 = vld [vmem:[%s3423_s0 + $0x10] sm:$0xff] }
  0x19   :  { %v512_v14 = vsel %vm447_vm0, %v300_v10, 0  ;;  %v62_v21 = vld [vmem:[%s3423_s0 + $0x128] sm:$0xff]  ;;  %v77_v22 = vld [vmem:[%s3423_s0 + $0x1a0] sm:$0xff]  ;;  %v291_v25 = vpack.c.bf16 %v46_v19, %v45_v17  ;;  %v28_v32 = vld [vmem:[%s3423_s0 + $0x18] sm:$0xff] }
  0x1a   :  { %v536_v18 = vsel %vm447_vm0, %v308_v11, 0  ;;  %v78_v23 = vld [vmem:[%s3423_s0 + $0x1a8] sm:$0xff]  ;;  %v299_v26 = vpack.c.bf16 %v62_v21, %v61_v20  ;;  %v461_v28 = vsel %vm447_vm0, %v283_v24, 0  ;;  %v43_v33 = vld [vmem:[%s3423_s0 + $0x90] sm:$0xff]  ;;  %v44_v35 = vld [vmem:[%s3423_s0 + $0x98] sm:$0xff]  ;;  %v282_v40 = vpack.c.bf16 %v28_v32, %v27_v31 }
  0x1b   :  { %v307_v27 = vpack.c.bf16 %v78_v23, %v77_v22  ;;  %v485_v29 = vsel %vm447_vm0, %v291_v25, 0  ;;  %v59_v36 = vld [vmem:[%s3423_s0 + $0x110] sm:$0xff]  ;;  %v60_v37 = vld [vmem:[%s3423_s0 + $0x118] sm:$0xff]  ;;  %v290_v41 = vpack.c.bf16 %v44_v35, %v43_v33  ;;  %v25_v45 = vld [vmem:[%s3423_s0] sm:$0xff] }
  0x1c   :  { %v509_v30 = vsel %vm447_vm0, %v299_v26, 0  ;;  %v75_v38 = vld [vmem:[%s3423_s0 + $0x190] sm:$0xff]  ;;  %v76_v39 = vld [vmem:[%s3423_s0 + $0x198] sm:$0xff]  ;;  %v298_v42 = vpack.c.bf16 %v60_v37, %v59_v36  ;;  %v458_v44 = vsel %vm447_vm0, %v282_v40, 0  ;;  %v26_v46 = vld [vmem:[%s3423_s0 + $0x8] sm:$0xff] }
  0x1d   :  { %841 = vmatpush.bf16.xpose.msra.mxu0 %v467_v60  ;;  %v533_v34 = vsel %vm447_vm0, %v307_v27, 0  ;;  %v306_v43 = vpack.c.bf16 %v76_v39, %v75_v38  ;;  %v482_v47 = vsel %vm447_vm0, %v290_v41, 0  ;;  %v41_v49 = vld [vmem:[%s3423_s0 + $0x80] sm:$0xff]  ;;  %v42_v50 = vld [vmem:[%s3423_s0 + $0x88] sm:$0xff]  ;;  %v103_v56 = vld [vmem:[%s3423_s0 + $0x270] sm:$0xff]  ;;  %v281_v59 = vpack.c.bf16 %v26_v46, %v25_v45 }
  0x1e   :  { %860 = vmatpush.bf16.xpose.msra.mxu1 %v491_v61  ;;  %v506_v48 = vsel %vm447_vm0, %v298_v42, 0  ;;  %v57_v51 = vld [vmem:[%s3423_s0 + $0x100] sm:$0xff]  ;;  %v58_v53 = vld [vmem:[%s3423_s0 + $0x108] sm:$0xff]  ;;  %v104_v57 = vld [vmem:[%s3423_s0 + $0x278] sm:$0xff]  ;;  %v289_v63 = vpack.c.bf16 %v42_v50, %v41_v49 }
  0x1f   :  { %879 = vmatpush.bf16.xpose.msra.mxu2 %v515_v62  ;;  %v530_v52 = vsel %vm447_vm0, %v306_v43, 0  ;;  %v73_v54 = vld [vmem:[%s3423_s0 + $0x180] sm:$0xff]  ;;  %v74_v55 = vld [vmem:[%s3423_s0 + $0x188] sm:$0xff]  ;;  %v119_v58 = vld [vmem:[%s3423_s0 + $0x2f0] sm:$0xff]  ;;  %v297_v0 = vpack.c.bf16 %v58_v53, %v57_v51  ;;  %v320_v4 = vpack.c.bf16 %v104_v57, %v103_v56  ;;  %v455_v7 = vsel %vm447_vm0, %v281_v59, 0 }
  0x20   :  { %898 = vmatpush.bf16.xpose.msra.mxu3 %v539_v2  ;;  %v120_v60 = vld [vmem:[%s3423_s0 + $0x2f8] sm:$0xff]  ;;  %v135_v61 = vld [vmem:[%s3423_s0 + $0x370] sm:$0xff]  ;;  %v305_v3 = vpack.c.bf16 %v74_v55, %v73_v54  ;;  %v479_v9 = vsel %vm447_vm0, %v289_v63, 0  ;;  %v101_v15 = vld [vmem:[%s3423_s0 + $0x260] sm:$0xff] }
  0x21   :  { %v136_v62 = vld [vmem:[%s3423_s0 + $0x378] sm:$0xff]  ;;  %v151_v1 = vld [vmem:[%s3423_s0 + $0x3f0] sm:$0xff]  ;;  %v328_v5 = vpack.c.bf16 %v120_v60, %v119_v58  ;;  %v503_v10 = vsel %vm447_vm0, %v297_v0, 0  ;;  %v102_v16 = vld [vmem:[%s3423_s0 + $0x268] sm:$0xff] }
  0x22   :  { %v152_v2 = vld [vmem:[%s3423_s0 + $0x3f8] sm:$0xff]  ;;  %v336_v6 = vpack.c.bf16 %v136_v62, %v135_v61  ;;  %v527_v11 = vsel %vm447_vm0, %v305_v3, 0  ;;  %v117_v17 = vld [vmem:[%s3423_s0 + $0x2e0] sm:$0xff]  ;;  %v118_v19 = vld [vmem:[%s3423_s0 + $0x2e8] sm:$0xff]  ;;  %v319_v24 = vpack.c.bf16 %v102_v16, %v101_v15  ;;  %v2114_v16 = vmov 0  }
  0x23   :  { %v344_v8 = vpack.c.bf16 %v152_v2, %v151_v1  ;;  %v133_v20 = vld [vmem:[%s3423_s0 + $0x360] sm:$0xff]  ;;  %v134_v21 = vld [vmem:[%s3423_s0 + $0x368] sm:$0xff]  ;;  %v327_v25 = vpack.c.bf16 %v118_v19, %v117_v17  ;;  %v99_v32 = vld [vmem:[%s3423_s0 + $0x250] sm:$0xff]  ;;  %2083 = vset.pattern.permute.xlu0 %v2114_v16  ;;  %2084 = vset.pattern.permute.xlu1 %v2114_v16 }
  0x24   :  { %v149_v22 = vld [vmem:[%s3423_s0 + $0x3e0] sm:$0xff]  ;;  %v150_v23 = vld [vmem:[%s3423_s0 + $0x3e8] sm:$0xff]  ;;  %v335_v26 = vpack.c.bf16 %v134_v21, %v133_v20  ;;  %v100_v33 = vld [vmem:[%s3423_s0 + $0x258] sm:$0xff]  ;;  %2085 = vset.pattern.permute.xlu2 %v2114_v16 }
  0x25   :  { %842 = vmatpush.bf16.xpose.msra.mxu0 %v464_v12  ;;  %v572_v12 = vsel %vm447_vm0, %v320_v4, 0  ;;  %v2430_v27 = vld [vmem:[%s3424_s1] sm:$0xff]  ;;  %v116_v36 = vld [vmem:[%s3423_s0 + $0x2d8] sm:$0xff]  ;;  %v131_v37 = vld [vmem:[%s3423_s0 + $0x350] sm:$0xff]  ;;  %v318_v41 = vpack.c.bf16 %v100_v33, %v99_v32 }
  0x26   :  { %861 = vmatpush.bf16.xpose.msra.mxu1 %v488_v13  ;;  %v596_v13 = vsel %vm447_vm0, %v328_v5, 0  ;;  %v617_v31 = vsel %vm447_vm0, %v335_v26, 0  ;;  %v132_v38 = vld [vmem:[%s3423_s0 + $0x358] sm:$0xff]  ;;  %v147_v39 = vld [vmem:[%s3423_s0 + $0x3d0] sm:$0xff]  ;;  %v98_v49 = vld [vmem:[%s3423_s0 + $0x248] sm:$0xff] }
  0x27   :  { %880 = vmatpush.bf16.xpose.msra.mxu2 %v512_v14  ;;  %v620_v14 = vsel %vm447_vm0, %v336_v6, 0  ;;  %v148_v40 = vld [vmem:[%s3423_s0 + $0x3d8] sm:$0xff]  ;;  %v334_v43 = vpack.c.bf16 %v132_v38, %v131_v37  ;;  %v566_v45 = vsel %vm447_vm0, %v318_v41, 0  ;;  %v113_v50 = vld [vmem:[%s3423_s0 + $0x2c0] sm:$0xff]  ;;  %v130_v54 = vld [vmem:[%s3423_s0 + $0x348] sm:$0xff] }
  0x28   :  { %899 = vmatpush.bf16.xpose.msra.mxu3 %v536_v18  ;;  %v644_v18 = vsel %vm447_vm0, %v344_v8, 0  ;;  %v129_v53 = vld [vmem:[%s3423_s0 + $0x340] sm:$0xff]  ;;  %v146_v56 = vld [vmem:[%s3423_s0 + $0x3c8] sm:$0xff]  ;;  %v95_v1 = vld [vmem:[%s3423_s0 + $0x230] sm:$0xff] }
  0x29   :  { %v145_v55 = vld [vmem:[%s3423_s0 + $0x3c0] sm:$0xff]  ;;  %v333_v59 = vpack.c.bf16 %v130_v54, %v129_v53  ;;  %v2499_v60 = vld [vmem:[%s3424_s1 + $0x8] sm:$0xff]  ;;  %v96_v2 = vld [vmem:[%s3423_s0 + $0x238] sm:$0xff] }
  0x2a   :  { %v341_v61 = vpack.c.bf16 %v146_v56, %v145_v55  ;;  %v111_v3 = vld [vmem:[%s3423_s0 + $0x2b0] sm:$0xff]  ;;  %v112_v5 = vld [vmem:[%s3423_s0 + $0x2b8] sm:$0xff]  ;;  %v93_v19 = vld [vmem:[%s3423_s0 + $0x220] sm:$0xff] }
  0x2b   :  { %v611_v0 = vsel %vm447_vm0, %v333_v59, 0  ;;  %v127_v6 = vld [vmem:[%s3423_s0 + $0x330] sm:$0xff]  ;;  %v94_v20 = vld [vmem:[%s3423_s0 + $0x228] sm:$0xff]  ;;  %v109_v21 = vld [vmem:[%s3423_s0 + $0x2a0] sm:$0xff] }
  0x2c   :  { %v635_v4 = vsel %vm447_vm0, %v341_v61, 0  ;;  %v143_v8 = vld [vmem:[%s3423_s0 + $0x3b0] sm:$0xff]  ;;  %v141_v26 = vld [vmem:[%s3423_s0 + $0x3a0] sm:$0xff]  ;;  %v90_v54 = vld [vmem:[%s3423_s0 + $0x208] sm:$0xff] }
  0x2d   :  { %843 = vmatpush.bf16.xpose.msra.mxu0 %v461_v28  ;;  %v343_v28 = vpack.c.bf16 %v150_v23, %v149_v22  ;;  %v110_v23 = vld [vmem:[%s3423_s0 + $0x2a8] sm:$0xff]  ;;  %v413_v33 = vld [vmem:[%s3428_s5] sm:$0xff]  ;;  %v91_v38 = vld [vmem:[%s3423_s0 + $0x210] sm:$0xff] }
  0x2e   :  { %862 = vmatpush.bf16.xpose.msra.mxu1 %v485_v29  ;;  %v569_v29 = vsel %vm447_vm0, %v319_v24, 0  ;;  %v125_v24 = vld [vmem:[%s3423_s0 + $0x320] sm:$0xff]  ;;  %419 = vperm.xlu1 %2084, %v413_v33   ;;  %v214_v33 = vld [vmem:[%s3423_s0 + $0x5e8] sm:$0xff] }
  0x2f   :  { %881 = vmatpush.bf16.xpose.msra.mxu2 %v509_v30  ;;  %v593_v30 = vsel %vm447_vm0, %v327_v25, 0  ;;  %v641_v35 = vsel %vm447_vm0, %v343_v28, 0  ;;  %v126_v25 = vld [vmem:[%s3423_s0 + $0x328] sm:$0xff]  ;;  %v89_v53 = vld [vmem:[%s3423_s0 + $0x200] sm:$0xff] }
  0x30   :  { %900 = vmatpush.bf16.xpose.msra.mxu3 %v533_v34  ;;  %v115_v34 = vld [vmem:[%s3423_s0 + $0x2d0] sm:$0xff]  ;;  %v142_v28 = vld [vmem:[%s3423_s0 + $0x3a8] sm:$0xff]  ;;  %v121_v59 = vld [vmem:[%s3423_s0 + $0x300] sm:$0xff] }
  0x31   :  { %v326_v42 = vpack.c.bf16 %v116_v36, %v115_v34  ;;  %v339_v32 = vpack.c.bf16 %v142_v28, %v141_v26  ;;  %v416_v34 = vld [vmem:[%s3428_s5 + $0x18] sm:$0xff]  ;;  %v181_v26 = vld [vmem:[%s3423_s0 + $0x4e0] sm:$0xff] }
  0x33   :  { %v590_v46 = vsel %vm447_vm0, %v326_v42, 0  ;;  %v629_v41 = vsel %vm447_vm0, %v339_v32, 0  ;;  %v108_v42 = vld [vmem:[%s3423_s0 + $0x298] sm:$0xff]  ;;  %v213_v32 = vld [vmem:[%s3423_s0 + $0x5e0] sm:$0xff] }
  0x35   :  { %844 = vmatpush.bf16.xpose.msra.mxu0 %v458_v44  ;;  %v342_v44 = vpack.c.bf16 %v148_v40, %v147_v39  ;;  %v92_v39 = vld [vmem:[%s3423_s0 + $0x218] sm:$0xff]  ;;  %v107_v40 = vld [vmem:[%s3423_s0 + $0x290] sm:$0xff] }
  0x36   :  { %863 = vmatpush.bf16.xpose.msra.mxu1 %v482_v47  ;;  %v614_v47 = vsel %vm447_vm0, %v334_v43, 0  ;;  %v123_v43 = vld [vmem:[%s3423_s0 + $0x310] sm:$0xff] }
  0x37   :  { %882 = vmatpush.bf16.xpose.msra.mxu2 %v506_v48  ;;  %v97_v48 = vld [vmem:[%s3423_s0 + $0x240] sm:$0xff]  ;;  %v638_v51 = vsel %vm447_vm0, %v342_v44, 0  ;;  %v124_v44 = vld [vmem:[%s3423_s0 + $0x318] sm:$0xff] }
  0x38   :  { %901 = vmatpush.bf16.xpose.msra.mxu3 %v530_v52  ;;  %v114_v52 = vld [vmem:[%s3423_s0 + $0x2c8] sm:$0xff]  ;;  %v317_v57 = vpack.c.bf16 %v98_v49, %v97_v48  ;;  %v322_v48 = vpack.c.bf16 %v108_v42, %v107_v40  ;;  %v330_v49 = vpack.c.bf16 %v124_v44, %v123_v43  ;;  %v164_v42 = vld [vmem:[%s3423_s0 + $0x458] sm:$0xff]  ;;  %v179_v43 = vld [vmem:[%s3423_s0 + $0x4d0] sm:$0xff] }
  0x39   :  { %v325_v58 = vpack.c.bf16 %v114_v52, %v113_v50 }
  0x3a   :  { %v563_v62 = vsel %vm447_vm0, %v317_v57, 0  ;;  %v578_v55 = vsel %vm447_vm0, %v322_v48, 0  ;;  %v602_v56 = vsel %vm447_vm0, %v330_v49, 0  ;;  %v105_v57 = vld [vmem:[%s3423_s0 + $0x280] sm:$0xff]  ;;  %v211_v48 = vld [vmem:[%s3423_s0 + $0x5d0] sm:$0xff]  ;;  %v212_v49 = vld [vmem:[%s3423_s0 + $0x5d8] sm:$0xff] }
  0x3b   :  { %v587_v63 = vsel %vm447_vm0, %v325_v58, 0  ;;  %v106_v58 = vld [vmem:[%s3423_s0 + $0x288] sm:$0xff] }
  0x3d   :  { %845 = vmatpush.bf16.xpose.msra.mxu0 %v455_v7  ;;  %v128_v7 = vld [vmem:[%s3423_s0 + $0x338] sm:$0xff] }
  0x3e   :  { %864 = vmatpush.bf16.xpose.msra.mxu1 %v479_v9  ;;  %v144_v9 = vld [vmem:[%s3423_s0 + $0x3b8] sm:$0xff] }
  0x3f   :  { %883 = vmatpush.bf16.xpose.msra.mxu2 %v503_v10  ;;  %v316_v10 = vpack.c.bf16 %v96_v2, %v95_v1  ;;  %v167_v1 = vld [vmem:[%s3423_s0 + $0x470] sm:$0xff]  ;;  %v168_v2 = vld [vmem:[%s3423_s0 + $0x478] sm:$0xff] }
  0x40   :  { %902 = vmatpush.bf16.xpose.msra.mxu3 %v527_v11  ;;  %v324_v11 = vpack.c.bf16 %v112_v5, %v111_v3  ;;  %v183_v3 = vld [vmem:[%s3423_s0 + $0x4f0] sm:$0xff]  ;;  %v184_v5 = vld [vmem:[%s3423_s0 + $0x4f8] sm:$0xff] }
  0x41   :  { %v560_v15 = vsel %vm447_vm0, %v316_v10, 0  ;;  %v215_v10 = vld [vmem:[%s3423_s0 + $0x5f0] sm:$0xff] }
  0x42   :  { %v584_v17 = vsel %vm447_vm0, %v324_v11, 0  ;;  %v216_v11 = vld [vmem:[%s3423_s0 + $0x5f8] sm:$0xff] }
  0x44   :  { %2010 = vmatmul.msk.bf16.vlgmr.msra.gmra.mxu0 %vm447_vm0, %v2430_v27 }
  0x45   :  { %914 = vmatpush.bf16.xpose.msrb.mxu0 %v572_v12  ;;  %2012 = vmatmul.msk.bf16.vlgmr.msra.gmra.mxu1 %vm447_vm0, %v2430_v27  ;;  %v332_v12 = vpack.c.bf16 %v128_v7, %v127_v6  ;;  %v199_v6 = vld [vmem:[%s3423_s0 + $0x570] sm:$0xff]  ;;  %v200_v7 = vld [vmem:[%s3423_s0 + $0x578] sm:$0xff] }
  0x46   :  { %933 = vmatpush.bf16.xpose.msrb.mxu1 %v596_v13  ;;  %2014 = vmatmul.msk.bf16.vlgmr.msra.gmra.mxu2 %vm447_vm0, %v2430_v27  ;;  %v340_v13 = vpack.c.bf16 %v144_v9, %v143_v8  ;;  %v321_v8 = vpack.c.bf16 %v106_v58, %v105_v57  ;;  %v161_v57 = vld [vmem:[%s3423_s0 + $0x440] sm:$0xff]  ;;  %v162_v58 = vld [vmem:[%s3423_s0 + $0x448] sm:$0xff] }
  0x47   :  { %952 = vmatpush.bf16.xpose.msrb.mxu2 %v620_v14  ;;  %2016 = vmatmul.msk.bf16.vlgmr.msra.gmra.mxu3 %vm447_vm0, %v2430_v27  ;;  %v415_v14 = vld [vmem:[%s3428_s5 + $0x10] sm:$0xff] }
  0x48   :  { %971 = vmatpush.bf16.xpose.msrb.mxu3 %v644_v18  ;;  %v608_v18 = vsel %vm447_vm0, %v332_v12, 0  ;;  %429 = vperm.xlu0 %2083, %v415_v14   ;;  %v632_v22 = vsel %vm447_vm0, %v340_v13, 0  ;;  %v352_v13 = vpack.c.bf16 %v168_v2, %v167_v1  ;;  %v360_v14 = vpack.c.bf16 %v184_v5, %v183_v3  ;;  %v209_v1 = vld [vmem:[%s3423_s0 + $0x5c0] sm:$0xff]  ;;  %v210_v2 = vld [vmem:[%s3423_s0 + $0x5c8] sm:$0xff] }
  0x49   :  { %v349_v3 = vpack.c.bf16 %v162_v58, %v161_v57  ;;  %v153_v57 = vld [vmem:[%s3423_s0 + $0x400] sm:$0xff]  ;;  %v154_v58 = vld [vmem:[%s3423_s0 + $0x408] sm:$0xff] }
  0x4d   :  { %915 = vmatpush.bf16.xpose.msrb.mxu0 %v569_v29  ;;  %v315_v29 = vpack.c.bf16 %v94_v20, %v93_v19 }
  0x4e   :  { %934 = vmatpush.bf16.xpose.msrb.mxu1 %v593_v30  ;;  %v323_v30 = vpack.c.bf16 %v110_v23, %v109_v21  ;;  %v668_v21 = vsel %vm447_vm0, %v352_v13, 0 }
  0x4f   :  { %953 = vmatpush.bf16.xpose.msrb.mxu2 %v617_v31  ;;  %v331_v31 = vpack.c.bf16 %v126_v25, %v125_v24  ;;  %v165_v24 = vld [vmem:[%s3423_s0 + $0x460] sm:$0xff]  ;;  %v166_v25 = vld [vmem:[%s3423_s0 + $0x468] sm:$0xff] }
  0x50   :  { %972 = vmatpush.bf16.xpose.msrb.mxu3 %v641_v35  ;;  %v557_v35 = vsel %vm447_vm0, %v315_v29, 0  ;;  %v581_v36 = vsel %vm447_vm0, %v323_v30, 0  ;;  %434 = vperm.xlu0 %2083, %v416_v34   ;;  %v182_v29 = vld [vmem:[%s3423_s0 + $0x4e8] sm:$0xff]  ;;  %v197_v30 = vld [vmem:[%s3423_s0 + $0x560] sm:$0xff]  ;;  %v351_v34 = vpack.c.bf16 %v166_v25, %v165_v24 }
  0x51   :  { %v605_v37 = vsel %vm447_vm0, %v331_v31, 0  ;;  %v198_v31 = vld [vmem:[%s3423_s0 + $0x568] sm:$0xff] }
  0x54   :  { %2011 = vmatmul.msk.bf16.gmra.mxu0 %vm447_vm0, %v2499_v60 }
  0x55   :  { %916 = vmatpush.bf16.xpose.msrb.mxu0 %v566_v45  ;;  %2013 = vmatmul.msk.bf16.gmra.mxu1 %vm447_vm0, %v2499_v60  ;;  %v139_v45 = vld [vmem:[%s3423_s0 + $0x390] sm:$0xff] }
  0x56   :  { %935 = vmatpush.bf16.xpose.msrb.mxu1 %v590_v46  ;;  %2015 = vmatmul.msk.bf16.gmra.mxu2 %vm447_vm0, %v2499_v60  ;;  %v140_v46 = vld [vmem:[%s3423_s0 + $0x398] sm:$0xff] }
  0x57   :  { %954 = vmatpush.bf16.xpose.msrb.mxu2 %v614_v47  ;;  %2017 = vmatmul.msk.bf16.gmra.mxu3 %vm447_vm0, %v2499_v60  ;;  %v314_v47 = vpack.c.bf16 %v92_v39, %v91_v38  ;;  %v338_v50 = vpack.c.bf16 %v140_v46, %v139_v45  ;;  %v665_v38 = vsel %vm447_vm0, %v351_v34, 0  ;;  %v180_v45 = vld [vmem:[%s3423_s0 + $0x4d8] sm:$0xff]  ;;  %v195_v46 = vld [vmem:[%s3423_s0 + $0x550] sm:$0xff]  ;;  %v205_v34 = vld [vmem:[%s3423_s0 + $0x5a0] sm:$0xff] }
  0x58   :  { %973 = vmatpush.bf16.xpose.msrb.mxu3 %v638_v51  ;;  %v414_v51 = vld [vmem:[%s3428_s5 + $0x8] sm:$0xff] }
  0x59   :  { %v554_v52 = vsel %vm447_vm0, %v314_v47, 0  ;;  %424 = vperm.xlu1 %2084, %v414_v51   ;;  %v626_v61 = vsel %vm447_vm0, %v338_v50, 0  ;;  %v196_v47 = vld [vmem:[%s3423_s0 + $0x558] sm:$0xff]  ;;  %v358_v51 = vpack.c.bf16 %v180_v45, %v179_v43  ;;  %v155_v43 = vld [vmem:[%s3423_s0 + $0x410] sm:$0xff] }
  0x5a   :  { %v171_v45 = vld [vmem:[%s3423_s0 + $0x490] sm:$0xff] }
  0x5d   :  { %917 = vmatpush.bf16.xpose.msrb.mxu0 %v563_v62  ;;  %v122_v62 = vld [vmem:[%s3423_s0 + $0x308] sm:$0xff] }
  0x5e   :  { %936 = vmatpush.bf16.xpose.msrb.mxu1 %v587_v63  ;;  %v137_v63 = vld [vmem:[%s3423_s0 + $0x380] sm:$0xff]  ;;  %v329_v9 = vpack.c.bf16 %v122_v62, %v121_v59  ;;  %v178_v62 = vld [vmem:[%s3423_s0 + $0x4c8] sm:$0xff] }
  0x5f   :  { %955 = vmatpush.bf16.xpose.msrb.mxu2 %v611_v0  ;;  %v138_v0 = vld [vmem:[%s3423_s0 + $0x388] sm:$0xff]  ;;  %v177_v59 = vld [vmem:[%s3423_s0 + $0x4c0] sm:$0xff] }
  0x60   :  { %974 = vmatpush.bf16.xpose.msrb.mxu3 %v635_v4  ;;  %v313_v4 = vpack.c.bf16 %v90_v54, %v89_v53  ;;  %v337_v12 = vpack.c.bf16 %v138_v0, %v137_v63  ;;  %v599_v19 = vsel %vm447_vm0, %v329_v9, 0  ;;  %v374_v53 = vpack.c.bf16 %v212_v49, %v211_v48  ;;  %v193_v63 = vld [vmem:[%s3423_s0 + $0x540] sm:$0xff]  ;;  %v194_v0 = vld [vmem:[%s3423_s0 + $0x548] sm:$0xff]  ;;  %v187_v48 = vld [vmem:[%s3423_s0 + $0x510] sm:$0xff] }
  0x61   :  { %v365_v5 = vpack.c.bf16 %v194_v0, %v193_v63  ;;  %v188_v49 = vld [vmem:[%s3423_s0 + $0x518] sm:$0xff]  ;;  %v170_v63 = vld [vmem:[%s3423_s0 + $0x488] sm:$0xff]  ;;  %v185_v0 = vld [vmem:[%s3423_s0 + $0x500] sm:$0xff] }
  0x62   :  { %v551_v16 = vsel %vm447_vm0, %v313_v4, 0  ;;  %v623_v20 = vsel %vm447_vm0, %v337_v12, 0  ;;  %v357_v4 = vpack.c.bf16 %v178_v62, %v177_v59  ;;  %v175_v12 = vld [vmem:[%s3423_s0 + $0x4b0] sm:$0xff]  ;;  %v169_v62 = vld [vmem:[%s3423_s0 + $0x480] sm:$0xff] }
  0x63   :  { %v707_v9 = vsel %vm447_vm0, %v365_v5, 0  ;;  %v231_v5 = vld [vmem:[%s3423_s0 + $0x670] sm:$0xff] }
  0x65   :  { %918 = vmatpush.bf16.xpose.msrb.mxu0 %v560_v15  ;;  %v368_v15 = vpack.c.bf16 %v200_v7, %v199_v6  ;;  %v373_v6 = vpack.c.bf16 %v210_v2, %v209_v1  ;;  %v659_v7 = vsel %vm447_vm0, %v349_v3, 0  ;;  %v186_v2 = vld [vmem:[%s3423_s0 + $0x508] sm:$0xff]  ;;  %v201_v3 = vld [vmem:[%s3423_s0 + $0x580] sm:$0xff] }
  0x66   :  { %937 = vmatpush.bf16.xpose.msrb.mxu1 %v584_v17  ;;  %v376_v17 = vpack.c.bf16 %v216_v11, %v215_v10  ;;  %v159_v10 = vld [vmem:[%s3423_s0 + $0x430] sm:$0xff]  ;;  %v160_v11 = vld [vmem:[%s3423_s0 + $0x438] sm:$0xff] }
  0x67   :  { %956 = vmatpush.bf16.xpose.msrb.mxu2 %v608_v18  ;;  %v575_v18 = vsel %vm447_vm0, %v321_v8, 0  ;;  %v716_v23 = vsel %vm447_vm0, %v368_v15, 0  ;;  %v683_v8 = vsel %vm447_vm0, %v357_v4, 0  ;;  %v731_v13 = vsel %vm447_vm0, %v373_v6, 0  ;;  %v191_v15 = vld [vmem:[%s3423_s0 + $0x530] sm:$0xff]  ;;  %v202_v4 = vld [vmem:[%s3423_s0 + $0x588] sm:$0xff] }
  0x68   :  { %975 = vmatpush.bf16.xpose.msrb.mxu3 %v632_v22  ;;  %v692_v22 = vsel %vm447_vm0, %v360_v14, 0  ;;  %v740_v28 = vsel %vm447_vm0, %v376_v17, 0  ;;  %v176_v14 = vld [vmem:[%s3423_s0 + $0x4b8] sm:$0xff]  ;;  %v207_v17 = vld [vmem:[%s3423_s0 + $0x5b0] sm:$0xff] }
  0x69   :  { %v232_v6 = vld [vmem:[%s3423_s0 + $0x678] sm:$0xff] }
  0x6d   :  { %919 = vmatpush.bf16.xpose.msrb.mxu0 %v557_v35  ;;  %v359_v35 = vpack.c.bf16 %v182_v29, %v181_v26  ;;  %v157_v26 = vld [vmem:[%s3423_s0 + $0x420] sm:$0xff] }
  0x6e   :  { %938 = vmatpush.bf16.xpose.msrb.mxu1 %v581_v36  ;;  %v367_v36 = vpack.c.bf16 %v198_v31, %v197_v30  ;;  %v173_v29 = vld [vmem:[%s3423_s0 + $0x4a0] sm:$0xff]  ;;  %v174_v31 = vld [vmem:[%s3423_s0 + $0x4a8] sm:$0xff] }
  0x6f   :  { %957 = vmatpush.bf16.xpose.msrb.mxu2 %v605_v37  ;;  %v375_v37 = vpack.c.bf16 %v214_v33, %v213_v32  ;;  %v689_v39 = vsel %vm447_vm0, %v359_v35, 0  ;;  %v189_v32 = vld [vmem:[%s3423_s0 + $0x520] sm:$0xff]  ;;  %v190_v33 = vld [vmem:[%s3423_s0 + $0x528] sm:$0xff] }
  0x70   :  { %976 = vmatpush.bf16.xpose.msrb.mxu3 %v629_v41  ;;  %v713_v40 = vsel %vm447_vm0, %v367_v36, 0  ;;  %v163_v41 = vld [vmem:[%s3423_s0 + $0x450] sm:$0xff]  ;;  %v206_v35 = vld [vmem:[%s3423_s0 + $0x5a8] sm:$0xff] }
  0x71   :  { %v737_v44 = vsel %vm447_vm0, %v375_v37, 0  ;;  %v350_v50 = vpack.c.bf16 %v164_v42, %v163_v41  ;;  %v355_v37 = vpack.c.bf16 %v174_v31, %v173_v29  ;;  %v229_v29 = vld [vmem:[%s3423_s0 + $0x660] sm:$0xff] }
  0x72   :  { %v245_v31 = vld [vmem:[%s3423_s0 + $0x6e0] sm:$0xff] }
  0x73   :  { %v662_v54 = vsel %vm447_vm0, %v350_v50, 0  ;;  %v677_v41 = vsel %vm447_vm0, %v355_v37, 0  ;;  %v203_v50 = vld [vmem:[%s3423_s0 + $0x590] sm:$0xff]  ;;  %v278_v37 = vld [vmem:[%s3423_s0 + $0x7e8] sm:$0xff] }
  0x75   :  { %920 = vmatpush.bf16.xpose.msrb.mxu0 %v554_v52  ;;  %v366_v52 = vpack.c.bf16 %v196_v47, %v195_v46  ;;  %v172_v47 = vld [vmem:[%s3423_s0 + $0x498] sm:$0xff] }
  0x76   :  { %939 = vmatpush.bf16.xpose.msrb.mxu1 %v578_v55  ;;  %v686_v55 = vsel %vm447_vm0, %v358_v51, 0  ;;  %v204_v51 = vld [vmem:[%s3423_s0 + $0x598] sm:$0xff] }
  0x77   :  { %958 = vmatpush.bf16.xpose.msrb.mxu2 %v602_v56  ;;  %v710_v56 = vsel %vm447_vm0, %v366_v52, 0 }
  0x78   :  { %977 = vmatpush.bf16.xpose.msrb.mxu3 %v626_v61  ;;  %v734_v61 = vsel %vm447_vm0, %v374_v53, 0  ;;  %v354_v53 = vpack.c.bf16 %v172_v47, %v171_v45  ;;  %v228_v47 = vld [vmem:[%s3423_s0 + $0x658] sm:$0xff] }
  0x7a   :  { %v674_v59 = vsel %vm447_vm0, %v354_v53, 0  ;;  %v275_v53 = vld [vmem:[%s3423_s0 + $0x7d0] sm:$0xff] }
  0x7d   :  { %921 = vmatpush.bf16.xpose.msrb.mxu0 %v551_v16  ;;  %v192_v16 = vld [vmem:[%s3423_s0 + $0x538] sm:$0xff] }
  0x7e   :  { %940 = vmatpush.bf16.xpose.msrb.mxu1 %v575_v18  ;;  %v208_v18 = vld [vmem:[%s3423_s0 + $0x5b8] sm:$0xff] }
  0x7f   :  { %959 = vmatpush.bf16.xpose.msrb.mxu2 %v599_v19  ;;  %v348_v19 = vpack.c.bf16 %v160_v11, %v159_v10  ;;  %v263_v10 = vld [vmem:[%s3423_s0 + $0x770] sm:$0xff]  ;;  %v264_v11 = vld [vmem:[%s3423_s0 + $0x778] sm:$0xff] }
  0x80   :  { %978 = vmatpush.bf16.xpose.msrb.mxu3 %v623_v20  ;;  %v356_v20 = vpack.c.bf16 %v176_v14, %v175_v12  ;;  %v353_v12 = vpack.c.bf16 %v170_v63, %v169_v62  ;;  %v279_v14 = vld [vmem:[%s3423_s0 + $0x7f0] sm:$0xff]  ;;  %v225_v62 = vld [vmem:[%s3423_s0 + $0x640] sm:$0xff]  ;;  %v226_v63 = vld [vmem:[%s3423_s0 + $0x648] sm:$0xff] }
  0x82   :  { %v680_v24 = vsel %vm447_vm0, %v356_v20, 0 }
  0x84   :  { %2018 = vmatmul.msk.bf16.vlgmr.msrb.gmra.mxu0 %vm447_vm0, %v2430_v27 }
  0x85   :  { %990 = vmatpush.bf16.xpose.msra.mxu0 %v668_v21  ;;  %2020 = vmatmul.msk.bf16.vlgmr.msrb.gmra.mxu1 %vm447_vm0, %v2430_v27  ;;  %v364_v21 = vpack.c.bf16 %v192_v16, %v191_v15  ;;  %v280_v15 = vld [vmem:[%s3423_s0 + $0x7f8] sm:$0xff]  ;;  %v369_v16 = vpack.c.bf16 %v202_v4, %v201_v3  ;;  %v257_v3 = vld [vmem:[%s3423_s0 + $0x740] sm:$0xff]  ;;  %v258_v4 = vld [vmem:[%s3423_s0 + $0x748] sm:$0xff] }
  0x86   :  { %1009 = vmatpush.bf16.xpose.msra.mxu1 %v692_v22  ;;  %2022 = vmatmul.msk.bf16.vlgmr.msrb.gmra.mxu2 %vm447_vm0, %v2430_v27  ;;  %v372_v22 = vpack.c.bf16 %v208_v18, %v207_v17  ;;  %v384_v17 = vpack.c.bf16 %v232_v6, %v231_v5  ;;  %v273_v5 = vld [vmem:[%s3423_s0 + $0x7c0] sm:$0xff]  ;;  %v274_v6 = vld [vmem:[%s3423_s0 + $0x7c8] sm:$0xff] }
  0x87   :  { %1028 = vmatpush.bf16.xpose.msra.mxu2 %v716_v23  ;;  %2024 = vmatmul.msk.bf16.vlgmr.msrb.gmra.mxu3 %vm447_vm0, %v2430_v27  ;;  %v656_v23 = vsel %vm447_vm0, %v348_v19, 0  ;;  %v704_v25 = vsel %vm447_vm0, %v364_v21, 0  ;;  %v400_v19 = vpack.c.bf16 %v264_v11, %v263_v10  ;;  %v408_v21 = vpack.c.bf16 %v280_v15, %v279_v14  ;;  %v1791_v10 = vld [vmem:[%s3427_s4] sm:$0xff] }
  0x88   :  { %1047 = vmatpush.bf16.xpose.msra.mxu3 %v740_v28  ;;  %v158_v28 = vld [vmem:[%s3423_s0 + $0x428] sm:$0xff]  ;;  %v728_v30 = vsel %vm447_vm0, %v372_v22, 0  ;;  %v671_v22 = vsel %vm447_vm0, %v353_v12, 0  ;;  %v405_v11 = vpack.c.bf16 %v274_v6, %v273_v5  ;;  %1794 = vperm.xlu1 %2084, %v1791_v10   ;;  %v217_v10 = vld [vmem:[%s3423_s0 + $0x600] sm:$0xff] }
  0x89   :  { %v347_v36 = vpack.c.bf16 %v158_v28, %v157_v26  ;;  %v812_v28 = vsel %vm447_vm0, %v400_v19, 0  ;;  %v239_v19 = vld [vmem:[%s3423_s0 + $0x6b0] sm:$0xff] }
  0x8d   :  { %991 = vmatpush.bf16.xpose.msra.mxu0 %v665_v38  ;;  %v363_v38 = vpack.c.bf16 %v190_v33, %v189_v32  ;;  %v836_v32 = vsel %vm447_vm0, %v408_v21, 0  ;;  %v246_v33 = vld [vmem:[%s3423_s0 + $0x6e8] sm:$0xff] }
  0x8e   :  { %1010 = vmatpush.bf16.xpose.msra.mxu1 %v689_v39  ;;  %v371_v39 = vpack.c.bf16 %v206_v35, %v205_v34  ;;  %v261_v34 = vld [vmem:[%s3423_s0 + $0x760] sm:$0xff]  ;;  %v262_v35 = vld [vmem:[%s3423_s0 + $0x768] sm:$0xff] }
  0x8f   :  { %1029 = vmatpush.bf16.xpose.msra.mxu2 %v713_v40  ;;  %v653_v40 = vsel %vm447_vm0, %v347_v36, 0  ;;  %v701_v42 = vsel %vm447_vm0, %v363_v38, 0  ;;  %v277_v36 = vld [vmem:[%s3423_s0 + $0x7e0] sm:$0xff] }
  0x90   :  { %1048 = vmatpush.bf16.xpose.msra.mxu3 %v737_v44  ;;  %v156_v44 = vld [vmem:[%s3423_s0 + $0x418] sm:$0xff]  ;;  %v725_v46 = vsel %vm447_vm0, %v371_v39, 0  ;;  %v391_v39 = vpack.c.bf16 %v246_v33, %v245_v31 }
  0x91   :  { %v346_v52 = vpack.c.bf16 %v156_v44, %v155_v43 }
  0x92   :  { %v785_v44 = vsel %vm447_vm0, %v391_v39, 0 }
  0x94   :  { %2019 = vmatmul.msk.bf16.gmra.mxu0 %vm447_vm0, %v2499_v60 }
  0x95   :  { %992 = vmatpush.bf16.xpose.msra.mxu0 %v662_v54  ;;  %2021 = vmatmul.msk.bf16.gmra.mxu1 %vm447_vm0, %v2499_v60  ;;  %v362_v54 = vpack.c.bf16 %v188_v49, %v187_v48  ;;  %v243_v48 = vld [vmem:[%s3423_s0 + $0x6d0] sm:$0xff] }
  0x96   :  { %1011 = vmatpush.bf16.xpose.msra.mxu1 %v686_v55  ;;  %2023 = vmatmul.msk.bf16.gmra.mxu2 %vm447_vm0, %v2499_v60  ;;  %v370_v55 = vpack.c.bf16 %v204_v51, %v203_v50  ;;  %v244_v50 = vld [vmem:[%s3423_s0 + $0x6d8] sm:$0xff]  ;;  %v259_v51 = vld [vmem:[%s3423_s0 + $0x750] sm:$0xff] }
  0x97   :  { %1030 = vmatpush.bf16.xpose.msra.mxu2 %v710_v56  ;;  %2025 = vmatmul.msk.bf16.gmra.mxu3 %vm447_vm0, %v2499_v60  ;;  %v650_v56 = vsel %vm447_vm0, %v346_v52, 0  ;;  %v260_v52 = vld [vmem:[%s3423_s0 + $0x758] sm:$0xff] }
  0x98   :  { %1049 = vmatpush.bf16.xpose.msra.mxu3 %v734_v61  ;;  %v698_v61 = vsel %vm447_vm0, %v362_v54, 0  ;;  %v722_v1 = vsel %vm447_vm0, %v370_v55, 0  ;;  %v390_v55 = vpack.c.bf16 %v244_v50, %v243_v48 }
  0x9d   :  { %993 = vmatpush.bf16.xpose.msra.mxu0 %v659_v7  ;;  %v247_v7 = vld [vmem:[%s3423_s0 + $0x6f0] sm:$0xff] }
  0x9e   :  { %1012 = vmatpush.bf16.xpose.msra.mxu1 %v683_v8  ;;  %v345_v8 = vpack.c.bf16 %v154_v58, %v153_v57 }
  0x9f   :  { %1031 = vmatpush.bf16.xpose.msra.mxu2 %v707_v9  ;;  %v248_v9 = vld [vmem:[%s3423_s0 + $0x6f8] sm:$0xff] }
  0xa0   :  { %1050 = vmatpush.bf16.xpose.msra.mxu3 %v731_v13  ;;  %v361_v13 = vpack.c.bf16 %v186_v2, %v185_v0  ;;  %v392_v18 = vpack.c.bf16 %v248_v9, %v247_v7  ;;  %v647_v20 = vsel %vm447_vm0, %v345_v8, 0  ;;  %v241_v0 = vld [vmem:[%s3423_s0 + $0x6c0] sm:$0xff]  ;;  %v242_v2 = vld [vmem:[%s3423_s0 + $0x6c8] sm:$0xff]  ;;  %v381_v7 = vpack.c.bf16 %v226_v63, %v225_v62  ;;  %v236_v63 = vld [vmem:[%s3423_s0 + $0x698] sm:$0xff] }
  0xa1   :  { %v389_v8 = vpack.c.bf16 %v242_v2, %v241_v0  ;;  %v397_v9 = vpack.c.bf16 %v258_v4, %v257_v3  ;;  %v251_v0 = vld [vmem:[%s3423_s0 + $0x710] sm:$0xff]  ;;  %v268_v3 = vld [vmem:[%s3423_s0 + $0x798] sm:$0xff] }
  0xa2   :  { %v788_v26 = vsel %vm447_vm0, %v392_v18, 0  ;;  %v755_v12 = vsel %vm447_vm0, %v381_v7, 0  ;;  %v224_v18 = vld [vmem:[%s3423_s0 + $0x638] sm:$0xff]  ;;  %v267_v2 = vld [vmem:[%s3423_s0 + $0x790] sm:$0xff] }
  0xa3   :  { %v779_v15 = vsel %vm447_vm0, %v389_v8, 0 }
  0xa5   :  { %994 = vmatpush.bf16.xpose.msra.mxu0 %v656_v23  ;;  %v695_v23 = vsel %vm447_vm0, %v361_v13, 0 }
  0xa6   :  { %1013 = vmatpush.bf16.xpose.msra.mxu1 %v680_v24  ;;  %v719_v24 = vsel %vm447_vm0, %v369_v16, 0  ;;  %v803_v16 = vsel %vm447_vm0, %v397_v9, 0  ;;  %v402_v9 = vpack.c.bf16 %v268_v3, %v267_v2 }
  0xa7   :  { %1032 = vmatpush.bf16.xpose.msra.mxu2 %v704_v25  ;;  %v764_v25 = vsel %vm447_vm0, %v384_v17, 0  ;;  %v223_v17 = vld [vmem:[%s3423_s0 + $0x630] sm:$0xff] }
  0xa8   :  { %1051 = vmatpush.bf16.xpose.msra.mxu3 %v728_v30  ;;  %v230_v30 = vld [vmem:[%s3423_s0 + $0x668] sm:$0xff] }
  0xa9   :  { %v383_v38 = vpack.c.bf16 %v230_v30, %v229_v29 }
  0xab   :  { %v761_v43 = vsel %vm447_vm0, %v383_v38, 0  ;;  %v237_v38 = vld [vmem:[%s3423_s0 + $0x6a0] sm:$0xff] }
  0xad   :  { %995 = vmatpush.bf16.xpose.msra.mxu0 %v653_v40  ;;  %v399_v40 = vpack.c.bf16 %v262_v35, %v261_v34 }
  0xae   :  { %1014 = vmatpush.bf16.xpose.msra.mxu1 %v677_v41  ;;  %v1532_v41 = vld [vmem:[%s3428_s5 + $0x30] sm:$0xff] }
  0xaf   :  { %1033 = vmatpush.bf16.xpose.msra.mxu2 %v701_v42  ;;  %v407_v42 = vpack.c.bf16 %v278_v37, %v277_v36  ;;  %1536 = vperm.xlu0 %2083, %v1532_v41   ;;  %v809_v45 = vsel %vm447_vm0, %v399_v40, 0  ;;  %v221_v36 = vld [vmem:[%s3423_s0 + $0x620] sm:$0xff]  ;;  %v222_v37 = vld [vmem:[%s3423_s0 + $0x628] sm:$0xff] }
  0xb0   :  { %1052 = vmatpush.bf16.xpose.msra.mxu3 %v725_v46  ;;  %v227_v46 = vld [vmem:[%s3423_s0 + $0x650] sm:$0xff]  ;;  %v238_v41 = vld [vmem:[%s3423_s0 + $0x6a8] sm:$0xff]  ;;  %v379_v48 = vpack.c.bf16 %v222_v37, %v221_v36 }
  0xb1   :  { %v833_v49 = vsel %vm447_vm0, %v407_v42, 0  ;;  %v382_v54 = vpack.c.bf16 %v228_v47, %v227_v46  ;;  %v253_v42 = vld [vmem:[%s3423_s0 + $0x720] sm:$0xff]  ;;  %v387_v50 = vpack.c.bf16 %v238_v41, %v237_v38 }
  0xb3   :  { %v758_v58 = vsel %vm447_vm0, %v382_v54, 0 }
  0xb5   :  { %996 = vmatpush.bf16.xpose.msra.mxu0 %v650_v56  ;;  %v398_v56 = vpack.c.bf16 %v260_v52, %v259_v51 }
  0xb6   :  { %1015 = vmatpush.bf16.xpose.msra.mxu1 %v674_v59  ;;  %v782_v59 = vsel %vm447_vm0, %v390_v55, 0  ;;  %v773_v55 = vsel %vm447_vm0, %v387_v50, 0 }
  0xb7   :  { %1034 = vmatpush.bf16.xpose.msra.mxu2 %v698_v61  ;;  %v806_v61 = vsel %vm447_vm0, %v398_v56, 0 }
  0xb8   :  { %1053 = vmatpush.bf16.xpose.msra.mxu3 %v722_v1 }
  0xbd   :  { %997 = vmatpush.bf16.xpose.msra.mxu0 %v647_v20 }
  0xbe   :  { %1016 = vmatpush.bf16.xpose.msra.mxu1 %v671_v22  ;;  %v827_v22 = vsel %vm447_vm0, %v405_v11, 0  ;;  %v218_v11 = vld [vmem:[%s3423_s0 + $0x608] sm:$0xff] }
  0xbf   :  { %1035 = vmatpush.bf16.xpose.msra.mxu2 %v695_v23  ;;  %v240_v23 = vld [vmem:[%s3423_s0 + $0x6b8] sm:$0xff] }
  0xc0   :  { %1054 = vmatpush.bf16.xpose.msra.mxu3 %v719_v24  ;;  %v255_v24 = vld [vmem:[%s3423_s0 + $0x730] sm:$0xff]  ;;  %v388_v29 = vpack.c.bf16 %v240_v23, %v239_v19  ;;  %v250_v19 = vld [vmem:[%s3423_s0 + $0x708] sm:$0xff] }
  0xc1   :  { %v3002_v13 = vpop.f32.mrf.mxu0  ;;  %v266_v23 = vld [vmem:[%s3423_s0 + $0x788] sm:$0xff] }
  0xc2   :  { %v3021_v20 = vpop.f32.mrf.mxu1  ;;  %v776_v34 = vsel %vm447_vm0, %v388_v29, 0 }
  0xc4   :  { %2026 = vmatmul.msk.bf16.vlgmr.msra.gmra.mxu0 %vm447_vm0, %v2430_v27 }
  0xc5   :  { %1066 = vmatpush.bf16.xpose.msrb.mxu0 %v764_v25  ;;  %2028 = vmatmul.msk.bf16.vlgmr.msra.gmra.mxu1 %vm447_vm0, %v2430_v27  ;;  %v256_v25 = vld [vmem:[%s3423_s0 + $0x738] sm:$0xff] }
  0xc6   :  { %1085 = vmatpush.bf16.xpose.msrb.mxu1 %v788_v26  ;;  %2030 = vmatmul.msk.bf16.vlgmr.msra.gmra.mxu2 %vm447_vm0, %v2430_v27  ;;  %v271_v26 = vld [vmem:[%s3423_s0 + $0x7b0] sm:$0xff]  ;;  %v396_v30 = vpack.c.bf16 %v256_v25, %v255_v24 }
  0xc7   :  { %1104 = vmatpush.bf16.xpose.msrb.mxu2 %v812_v28  ;;  %2032 = vmatmul.msk.bf16.vlgmr.msra.gmra.mxu3 %vm447_vm0, %v2430_v27  ;;  %v276_v27 = vld [vmem:[%s3423_s0 + $0x7d8] sm:$0xff]  ;;  %v380_v28 = vpack.c.bf16 %v224_v18, %v223_v17  ;;  %v249_v17 = vld [vmem:[%s3423_s0 + $0x700] sm:$0xff] }
  0xc8   :  { %1123 = vmatpush.bf16.xpose.msrb.mxu3 %v836_v32  ;;  %v406_v57 = vpack.c.bf16 %v276_v27, %v275_v53  ;;  %v800_v35 = vsel %vm447_vm0, %v396_v30, 0  ;;  %v3081_v53 = vpop.permute.xlu1 %419  ;;  %v749_v27 = vsel %vm447_vm0, %v379_v48, 0  ;;  %v393_v37 = vpack.c.bf16 %v250_v19, %v249_v17 }
  0xc9   :  { %v3004_v14 = vpop.f32.mrf.mxu2  ;;  %v752_v32 = vsel %vm447_vm0, %v380_v28, 0  ;;  %v3075_v46 = vpop.f32.mrf.mxu0 }
  0xca   :  { %v830_v1 = vsel %vm447_vm0, %v406_v57, 0  ;;  %v3023_v21 = vpop.f32.mrf.mxu3  ;;  %v3077_v47 = vpop.f32.mrf.mxu1  ;;  %v219_v57 = vld [vmem:[%s3423_s0 + $0x610] sm:$0xff] }
  0xcb   :  { %v905_v48 = vadd.f32 %v3023_v21, %v3081_v53 }
  0xcd   :  { %1067 = vmatpush.bf16.xpose.msrb.mxu0 %v761_v43  ;;  %v254_v43 = vld [vmem:[%s3423_s0 + $0x728] sm:$0xff] }
  0xce   :  { %1086 = vmatpush.bf16.xpose.msrb.mxu1 %v785_v44  ;;  %v269_v44 = vld [vmem:[%s3423_s0 + $0x7a0] sm:$0xff]  ;;  %v395_v51 = vpack.c.bf16 %v254_v43, %v253_v42 }
  0xcf   :  { %1105 = vmatpush.bf16.xpose.msrb.mxu2 %v809_v45  ;;  %v270_v45 = vld [vmem:[%s3423_s0 + $0x7a8] sm:$0xff] }
  0xd0   :  { %1124 = vmatpush.bf16.xpose.msrb.mxu3 %v833_v49  ;;  %v3079_v49 = vpop.permute.xlu0 %429  ;;  %v403_v52 = vpack.c.bf16 %v270_v45, %v269_v44  ;;  %v797_v56 = vsel %vm447_vm0, %v395_v51, 0 }
  0xd1   :  { %v3044_v33 = vpop.f32.mrf.mxu2  ;;  %v852_v7 = vpop.f32.mrf.mxu0 }
  0xd2   :  { %v3057_v39 = vpop.f32.mrf.mxu3  ;;  %v821_v62 = vsel %vm447_vm0, %v403_v52, 0  ;;  %v871_v8 = vpop.f32.mrf.mxu1  ;;  %v791_v52 = vsel %vm447_vm0, %v393_v37, 0 }
  0xd3   :  { %v872_v21 = vadd.f32 %v871_v8, %v3079_v49 }
  0xd4   :  { %2027 = vmatmul.msk.bf16.gmra.mxu0 %vm447_vm0, %v2499_v60 }
  0xd5   :  { %1068 = vmatpush.bf16.xpose.msrb.mxu0 %v758_v58  ;;  %2029 = vmatmul.msk.bf16.gmra.mxu1 %vm447_vm0, %v2499_v60  ;;  %v220_v58 = vld [vmem:[%s3423_s0 + $0x618] sm:$0xff]  ;;  %v1175_v2 = vmax.f32 %v872_v21, 0.0 }
  0xd6   :  { %1087 = vmatpush.bf16.xpose.msrb.mxu1 %v782_v59  ;;  %2031 = vmatmul.msk.bf16.gmra.mxu2 %vm447_vm0, %v2499_v60  ;;  %v235_v59 = vld [vmem:[%s3423_s0 + $0x690] sm:$0xff]  ;;  %v378_v4 = vpack.c.bf16 %v220_v58, %v219_v57  ;;  %v853_v57 = vadd.f32 %v852_v7, %v3079_v49  ;;  %v848_v7 = vadd.f32 %v3002_v13, %v3081_v53 }
  0xd7   :  { %1106 = vmatpush.bf16.xpose.msrb.mxu2 %v806_v61  ;;  %2033 = vmatmul.msk.bf16.gmra.mxu3 %vm447_vm0, %v2499_v60  ;;  %v272_v60 = vld [vmem:[%s3423_s0 + $0x7b8] sm:$0xff]  ;;  %v386_v5 = vpack.c.bf16 %v236_v63, %v235_v59 }
  0xd8   :  { %1125 = vmatpush.bf16.xpose.msrb.mxu3 %v830_v1  ;;  %v404_v31 = vpack.c.bf16 %v272_v60, %v271_v26  ;;  %v252_v1 = vld [vmem:[%s3423_s0 + $0x718] sm:$0xff]  ;;  %v746_v18 = vsel %vm447_vm0, %v378_v4, 0  ;;  %v3140_v60 = vpop.permute.xlu1 %424 }
  0xd9   :  { %v890_v54 = vpop.f32.mrf.mxu2  ;;  %v394_v6 = vpack.c.bf16 %v252_v1, %v251_v0  ;;  %v770_v28 = vsel %vm447_vm0, %v386_v5, 0  ;;  %v888_v41 = vadd.f32 %v3044_v33, %v3140_v60  ;;  %v907_v50 = vadd.f32 %v3057_v39, %v3140_v60 }
  0xda   :  { %v824_v40 = vsel %vm447_vm0, %v404_v31, 0  ;;  %v909_v61 = vpop.f32.mrf.mxu3  ;;  %v891_v24 = vadd.f32 %v890_v54, %v3079_v49  ;;  %v873_v54 = vpop.f32.mrf.mxu1  ;;  %v1174_v0 = vmax.f32 %v853_v57, 0.0  ;;  %v850_v8 = vadd.f32 %v3075_v46, %v3140_v60  ;;  %v2086_v46 = vld [vmem:[%s3424_s1] sm:$0xff] }
  0xdb   :  { %v910_v25 = vadd.f32 %v909_v61, %v3079_v49  ;;  %v794_v29 = vsel %vm447_vm0, %v394_v6, 0  ;;  %v1161_v63 = vmax.f32 %v907_v50, 0.0 }
  0xdc   :  { %v1176_v42 = vmax.f32 %v891_v24, 0.0 }
  0xdd   :  { %1069 = vmatpush.bf16.xpose.msrb.mxu0 %v755_v12  ;;  %v3117_v12 = vpop.permute.xlu0 %434  ;;  %v1177_v43 = vmax.f32 %v910_v25, 0.0 }
  0xde   :  { %1088 = vmatpush.bf16.xpose.msrb.mxu1 %v779_v15  ;;  %v233_v15 = vld [vmem:[%s3423_s0 + $0x680] sm:$0xff]  ;;  %v874_v39 = vadd.f32 %v873_v54, %v3117_v12 }
  0xdf   :  { %1107 = vmatpush.bf16.xpose.msrb.mxu2 %v803_v16  ;;  %v234_v16 = vld [vmem:[%s3423_s0 + $0x688] sm:$0xff] }
  0xe0   :  { %1126 = vmatpush.bf16.xpose.msrb.mxu3 %v827_v22  ;;  %v265_v22 = vld [vmem:[%s3423_s0 + $0x780] sm:$0xff]  ;;  %v1191_v3 = vmax.f32 %v874_v39, 0.0 }
  0xe1   :  { %v892_v26 = vpop.f32.mrf.mxu2  ;;  %v401_v38 = vpack.c.bf16 %v266_v23, %v265_v22  ;;  %v2087_v22 = vld [vmem:[%s3424_s1 + $0x8] sm:$0xff] }
  0xe2   :  { %v893_v30 = vadd.f32 %v892_v26, %v3117_v12  ;;  %v911_v31 = vpop.f32.mrf.mxu3  ;;  %v1223_v6 = vpack.c.bf16 %v1191_v3, %v1175_v2 }
  0xe3   :  { %v912_v36 = vadd.f32 %v911_v31, %v3117_v12  ;;  %v815_v33 = vsel %vm447_vm0, %v401_v38, 0 }
  0xe4   :  { %v1192_v44 = vmax.f32 %v893_v30, 0.0 }
  0xe5   :  { %1070 = vmatpush.bf16.xpose.msrb.mxu0 %v752_v32  ;;  %v818_v32 = vsel %vm447_vm0, %v402_v9, 0  ;;  %v1193_v45 = vmax.f32 %v912_v36, 0.0  ;;  %v867_v9 = vadd.f32 %v3021_v20, %v3081_v53 }
  0xe6   :  { %1089 = vmatpush.bf16.xpose.msrb.mxu1 %v776_v34  ;;  %v377_v34 = vpack.c.bf16 %v218_v11, %v217_v10  ;;  %v1224_v59 = vpack.c.bf16 %v1192_v44, %v1176_v42  ;;  %v869_v10 = vadd.f32 %v3077_v47, %v3140_v60 }
  0xe7   :  { %1108 = vmatpush.bf16.xpose.msrb.mxu2 %v800_v35  ;;  %v385_v35 = vpack.c.bf16 %v234_v16, %v233_v15  ;;  %v1225_v61 = vpack.c.bf16 %v1193_v45, %v1177_v43  ;;  %v1142_v15 = vmax.f32 %v848_v7, 0.0  ;;  %v1158_v16 = vmax.f32 %v850_v8, 0.0 }
  0xe8   :  { %1127 = vmatpush.bf16.xpose.msrb.mxu3 %v824_v40  ;;  %v886_v40 = vadd.f32 %v3004_v14, %v3081_v53  ;;  %v743_v51 = vsel %vm447_vm0, %v377_v34, 0  ;;  %v1143_v17 = vmax.f32 %v867_v9, 0.0 }
  0xe9   :  { %v767_v14 = vsel %vm447_vm0, %v385_v35, 0  ;;  %v1206_v13 = vpack.c.bf16 %v1158_v16, %v1142_v15 }
  0xed   :  { %1071 = vmatpush.bf16.xpose.msrb.mxu0 %v749_v27  ;;  %v854_v27 = vpop.f32.mrf.mxu0 }
  0xee   :  { %1090 = vmatpush.bf16.xpose.msrb.mxu1 %v773_v55  ;;  %v1144_v55 = vmax.f32 %v886_v40, 0.0  ;;  %v855_v58 = vadd.f32 %v854_v27, %v3117_v12 }
  0xef   :  { %1109 = vmatpush.bf16.xpose.msrb.mxu2 %v797_v56  ;;  %v1160_v56 = vmax.f32 %v888_v41, 0.0 }
  0xf0   :  { %1128 = vmatpush.bf16.xpose.msrb.mxu3 %v821_v62  ;;  %v1145_v62 = vmax.f32 %v905_v48, 0.0  ;;  %v1190_v1 = vmax.f32 %v855_v58, 0.0 }
  0xf1   :  { %v1208_v4 = vpack.c.bf16 %v1160_v56, %v1144_v55 }
  0xf2   :  { %v1222_v5 = vpack.c.bf16 %v1190_v1, %v1174_v0  ;;  %v1209_v11 = vpack.c.bf16 %v1161_v63, %v1145_v62 }
  0xf5   :  { %1072 = vmatpush.bf16.xpose.msrb.mxu0 %v746_v18  ;;  %v1159_v18 = vmax.f32 %v869_v10, 0.0 }
  0xf6   :  { %1091 = vmatpush.bf16.xpose.msrb.mxu1 %v770_v28 }
  0xf7   :  { %1110 = vmatpush.bf16.xpose.msrb.mxu2 %v794_v29  ;;  %v1207_v19 = vpack.c.bf16 %v1159_v18, %v1143_v17 }
  0xf8   :  { %1129 = vmatpush.bf16.xpose.msrb.mxu3 %v818_v32  ;;  %v3188_v32 = vld [vmem:[%s3425_s2] sm:$0xff] }
  0xfd   :  { %1073 = vmatpush.bf16.xpose.msrb.mxu0 %v743_v51 }
  0xfe   :  { %1092 = vmatpush.bf16.xpose.msrb.mxu1 %v767_v14 }
  0xff   :  { %1111 = vmatpush.bf16.xpose.msrb.mxu2 %v791_v52 }
 0x100   :  { %1130 = vmatpush.bf16.xpose.msrb.mxu3 %v815_v33 }
 0x101   :  { %v923_v20 = vpop.f32.mrf.mxu0 }
 0x102   :  { %v942_v47 = vpop.f32.mrf.mxu1  ;;  %v924_v36 = vadd.f32 %v923_v20, %v3081_v53 }
 0x103   :  { %v943_v40 = vadd.f32 %v942_v47, %v3081_v53 }
 0x104   :  { %2034 = vmatmul.msk.bf16.vlgmr.msrb.gmra.mxu0 %vm447_vm0, %v2086_v46  ;;  %v1146_v14 = vmax.f32 %v924_v36, 0.0 }
 0x105   :  { %1266 = vmatpush.bf16.msra.mxu0 %v1222_v5  ;;  %2036 = vmatmul.msk.bf16.vlgmr.msrb.gmra.mxu1 %vm447_vm0, %v2086_v46  ;;  %v1147_v27 = vmax.f32 %v943_v40, 0.0 }
 0x106   :  { %1280 = vmatpush.bf16.msra.mxu1 %v1223_v6  ;;  %2038 = vmatmul.msk.bf16.vlgmr.msrb.gmra.mxu2 %vm447_vm0, %v2086_v46 }
 0x107   :  { %1294 = vmatpush.bf16.msra.mxu2 %v1224_v59  ;;  %2040 = vmatmul.msk.bf16.vlgmr.msrb.gmra.mxu3 %vm447_vm0, %v2086_v46  ;;  %v1239_v46 = vld [vmem:[%s3428_s5 + $0x28] sm:$0xff] }
 0x108   :  { %1308 = vmatpush.bf16.msra.mxu3 %v1225_v61  ;;  %v1238_v61 = vld [vmem:[%s3428_s5 + $0x20] sm:$0xff] }
 0x109   :  { %1267 = vmatpush.bf16.msra.mxu0 %v1206_v13  ;;  %v961_v23 = vpop.f32.mrf.mxu2  ;;  %v925_v25 = vpop.f32.mrf.mxu0  ;;  %1244 = vperm.xlu2 %2085, %v1238_v61  }
 0x10a   :  { %1281 = vmatpush.bf16.msra.mxu1 %v1207_v19  ;;  %v980_v24 = vpop.f32.mrf.mxu3  ;;  %v944_v26 = vpop.f32.mrf.mxu1  ;;  %v926_v37 = vadd.f32 %v925_v25, %v3140_v60  ;;  %v962_v21 = vadd.f32 %v961_v23, %v3081_v53 }
 0x10b   :  { %1295 = vmatpush.bf16.msra.mxu2 %v1208_v4  ;;  %v945_v41 = vadd.f32 %v944_v26, %v3140_v60  ;;  %v981_v62 = vadd.f32 %v980_v24, %v3081_v53 }
 0x10c   :  { %1309 = vmatpush.bf16.msra.mxu3 %v1209_v11  ;;  %v1162_v52 = vmax.f32 %v926_v37, 0.0  ;;  %v1148_v8 = vmax.f32 %v962_v21, 0.0 }
 0x10d   :  { %v1163_v54 = vmax.f32 %v945_v41, 0.0  ;;  %v1149_v11 = vmax.f32 %v981_v62, 0.0 }
 0x10e   :  { %v1210_v1 = vpack.c.bf16 %v1162_v52, %v1146_v14 }
 0x10f   :  { %v1211_v5 = vpack.c.bf16 %v1163_v54, %v1147_v27 }
 0x111   :  { %v963_v28 = vpop.f32.mrf.mxu2  ;;  %v928_v30 = vpop.f32.mrf.mxu0  ;;  %1249 = vperm.xlu2 %2085, %v1239_v46   ;;  %v1909_v46 = vld [vmem:[%s3428_s5 + $0x38] sm:$0x1] }
 0x112   :  { %v982_v29 = vpop.f32.mrf.mxu3  ;;  %v947_v31 = vpop.f32.mrf.mxu1  ;;  %v929_v34 = vadd.f32 %v928_v30, %v3079_v49  ;;  %v964_v39 = vadd.f32 %v963_v28, %v3140_v60 }
 0x113   :  { %v948_v35 = vadd.f32 %v947_v31, %v3079_v49  ;;  %v983_v63 = vadd.f32 %v982_v29, %v3140_v60 }
 0x114   :  { %2035 = vmatmul.msk.bf16.gmra.mxu0 %vm447_vm0, %v2087_v22  ;;  %v1178_v44 = vmax.f32 %v929_v34, 0.0  ;;  %v1164_v9 = vmax.f32 %v964_v39, 0.0 }
 0x115   :  { %2037 = vmatmul.msk.bf16.gmra.mxu1 %vm447_vm0, %v2087_v22  ;;  %v1179_v50 = vmax.f32 %v948_v35, 0.0  ;;  %v1165_v15 = vmax.f32 %v983_v63, 0.0 }
 0x116   :  { %2039 = vmatmul.msk.bf16.gmra.mxu2 %vm447_vm0, %v2087_v22  ;;  %v1212_v13 = vpack.c.bf16 %v1164_v9, %v1148_v8 }
 0x117   :  { %2041 = vmatmul.msk.bf16.gmra.mxu3 %vm447_vm0, %v2087_v22  ;;  %v1213_v19 = vpack.c.bf16 %v1165_v15, %v1149_v11 }
 0x119   :  { %v966_v38 = vpop.f32.mrf.mxu2  ;;  %v930_v43 = vpop.f32.mrf.mxu0  ;;  %1912 = vperm.xlu2 %2085, %v1909_v46  }
 0x11a   :  { %v985_v42 = vpop.f32.mrf.mxu3  ;;  %v931_v45 = vadd.f32 %v930_v43, %v3117_v12  ;;  %v949_v48 = vpop.f32.mrf.mxu1  ;;  %v967_v55 = vadd.f32 %v966_v38, %v3079_v49 }
 0x11b   :  { %v950_v51 = vadd.f32 %v949_v48, %v3117_v12  ;;  %v986_v57 = vadd.f32 %v985_v42, %v3079_v49 }
 0x11c   :  { %v1194_v33 = vmax.f32 %v931_v45, 0.0  ;;  %v1180_v2 = vmax.f32 %v967_v55, 0.0 }
 0x11d   :  { %v1195_v56 = vmax.f32 %v950_v51, 0.0  ;;  %v1181_v6 = vmax.f32 %v986_v57, 0.0 }
 0x11e   :  { %v1226_v58 = vpack.c.bf16 %v1194_v33, %v1178_v44 }
 0x11f   :  { %v1227_v59 = vpack.c.bf16 %v1195_v56, %v1179_v50 }
 0x120   :  { %1322 = vmatpush.bf16.msrb.mxu0 %v1226_v58 }
 0x121   :  { %v968_v0 = vpop.f32.mrf.mxu2  ;;  %1336 = vmatpush.bf16.msrb.mxu1 %v1227_v59 }
 0x122   :  { %v969_v3 = vadd.f32 %v968_v0, %v3117_v12  ;;  %v987_v4 = vpop.f32.mrf.mxu3 }
 0x123   :  { %v988_v7 = vadd.f32 %v987_v4, %v3117_v12 }
 0x124   :  { %2046 = vmatmul.msk.bf16.vlgmr.msra.gmra.mxu0 %vm447_vm0, %v3188_v32  ;;  %v1196_v10 = vmax.f32 %v969_v3, 0.0 }
 0x125   :  { %2047 = vmatmul.msk.bf16.vlgmr.msra.gmra.mxu1 %vm447_vm0, %v3188_v32  ;;  %v1197_v16 = vmax.f32 %v988_v7, 0.0  ;;  %1323 = vmatpush.bf16.msrb.mxu0 %v1210_v1 }
 0x126   :  { %2048 = vmatmul.msk.bf16.vlgmr.msra.gmra.mxu2 %vm447_vm0, %v3188_v32  ;;  %v1228_v17 = vpack.c.bf16 %v1196_v10, %v1180_v2  ;;  %1337 = vmatpush.bf16.msrb.mxu1 %v1211_v5 }
 0x127   :  { %2049 = vmatmul.msk.bf16.vlgmr.msra.gmra.mxu3 %vm447_vm0, %v3188_v32  ;;  %v1229_v18 = vpack.c.bf16 %v1197_v16, %v1181_v6 }
 0x128   :  { %1350 = vmatpush.bf16.msrb.mxu2 %v1228_v17 }
 0x129   :  { %1364 = vmatpush.bf16.msrb.mxu3 %v1229_v18 }
 0x12c   :  { %1351 = vmatpush.bf16.msrb.mxu2 %v1212_v13 }
 0x12d   :  { %1365 = vmatpush.bf16.msrb.mxu3 %v1213_v19 }
 0x134   :  { %2050 = vmatmul.msk.bf16.vlgmr.msrb.gmra.mxu0 %vm447_vm0, %v3188_v32 }
 0x135   :  { %2051 = vmatmul.msk.bf16.vlgmr.msrb.gmra.mxu1 %vm447_vm0, %v3188_v32 }
 0x136   :  { %2052 = vmatmul.msk.bf16.vlgmr.msrb.gmra.mxu2 %vm447_vm0, %v3188_v32 }
 0x137   :  { %2053 = vmatmul.msk.bf16.vlgmr.msrb.gmra.mxu3 %vm447_vm0, %v3188_v32 }
 0x141   :  { %v999_v20 = vpop.f32.mrf.mxu0 }
 0x142   :  { %v1018_v47 = vpop.f32.mrf.mxu1  ;;  %v1000_v35 = vadd.f32 %v999_v20, %v3081_v53 }
 0x143   :  { %v1019_v38 = vadd.f32 %v1018_v47, %v3081_v53 }
 0x144   :  { %v1150_v51 = vmax.f32 %v1000_v35, 0.0 }
 0x145   :  { %v1151_v33 = vmax.f32 %v1019_v38, 0.0 }
 0x149   :  { %v1037_v22 = vpop.f32.mrf.mxu2  ;;  %v1001_v24 = vpop.f32.mrf.mxu0 }
 0x14a   :  { %v1056_v23 = vpop.f32.mrf.mxu3  ;;  %v1020_v25 = vpop.f32.mrf.mxu1  ;;  %v1002_v36 = vadd.f32 %v1001_v24, %v3140_v60  ;;  %v1038_v21 = vadd.f32 %v1037_v22, %v3081_v53 }
 0x14b   :  { %v1021_v40 = vadd.f32 %v1020_v25, %v3140_v60  ;;  %v1057_v2 = vadd.f32 %v1056_v23, %v3081_v53 }
 0x14c   :  { %v1166_v14 = vmax.f32 %v1002_v36, 0.0  ;;  %v1152_v8 = vmax.f32 %v1038_v21, 0.0 }
 0x14d   :  { %v1167_v27 = vmax.f32 %v1021_v40, 0.0  ;;  %v1153_v11 = vmax.f32 %v1057_v2, 0.0 }
 0x14e   :  { %v1214_v39 = vpack.c.bf16 %v1166_v14, %v1150_v51 }
 0x14f   :  { %v1215_v61 = vpack.c.bf16 %v1167_v27, %v1151_v33 }
 0x151   :  { %v1039_v26 = vpop.f32.mrf.mxu2  ;;  %v1004_v29 = vpop.f32.mrf.mxu0 }
 0x152   :  { %v1058_v28 = vpop.f32.mrf.mxu3  ;;  %v1023_v30 = vpop.f32.mrf.mxu1  ;;  %v1005_v31 = vadd.f32 %v1004_v29, %v3079_v49  ;;  %v1040_v62 = vadd.f32 %v1039_v26, %v3140_v60 }
 0x153   :  { %v1024_v34 = vadd.f32 %v1023_v30, %v3079_v49  ;;  %v1059_v3 = vadd.f32 %v1058_v28, %v3140_v60 }
 0x154   :  { %v1182_v43 = vmax.f32 %v1005_v31, 0.0  ;;  %v1168_v9 = vmax.f32 %v1040_v62, 0.0 }
 0x155   :  { %v1183_v48 = vmax.f32 %v1024_v34, 0.0  ;;  %v1169_v15 = vmax.f32 %v1059_v3, 0.0 }
 0x156   :  { %v1216_v17 = vpack.c.bf16 %v1168_v9, %v1152_v8 }
 0x157   :  { %v1217_v18 = vpack.c.bf16 %v1169_v15, %v1153_v11 }
 0x159   :  { %v1042_v37 = vpop.f32.mrf.mxu2  ;;  %v1006_v42 = vpop.f32.mrf.mxu0 }
 0x15a   :  { %v1061_v41 = vpop.f32.mrf.mxu3  ;;  %v1007_v44 = vadd.f32 %v1006_v42, %v3117_v12  ;;  %v1025_v45 = vpop.f32.mrf.mxu1  ;;  %v1043_v54 = vadd.f32 %v1042_v37, %v3079_v49 }
 0x15b   :  { %v1026_v50 = vadd.f32 %v1025_v45, %v3117_v12  ;;  %v1062_v56 = vadd.f32 %v1061_v41, %v3079_v49 }
 0x15c   :  { %v1198_v52 = vmax.f32 %v1007_v44, 0.0  ;;  %v1184_v63 = vmax.f32 %v1043_v54, 0.0 }
 0x15d   :  { %v1199_v55 = vmax.f32 %v1026_v50, 0.0  ;;  %v1185_v4 = vmax.f32 %v1062_v56, 0.0 }
 0x15e   :  { %v1230_v57 = vpack.c.bf16 %v1198_v52, %v1182_v43 }
 0x15f   :  { %v1231_v58 = vpack.c.bf16 %v1199_v55, %v1183_v48 }
 0x160   :  { %1378 = vmatpush.bf16.msra.mxu0 %v1230_v57 }
 0x161   :  { %v1044_v59 = vpop.f32.mrf.mxu2  ;;  %1392 = vmatpush.bf16.msra.mxu1 %v1231_v58 }
 0x162   :  { %v1045_v0 = vadd.f32 %v1044_v59, %v3117_v12  ;;  %v1063_v1 = vpop.f32.mrf.mxu3 }
 0x163   :  { %v1064_v5 = vadd.f32 %v1063_v1, %v3117_v12  ;;  %v3263_v51 = vpop.permute.xlu2 %1244 }
 0x164   :  { %v1200_v6 = vmax.f32 %v1045_v0, 0.0  ;;  %1379 = vmatpush.bf16.msra.mxu0 %v1214_v39 }
 0x165   :  { %v1201_v7 = vmax.f32 %v1064_v5, 0.0  ;;  %1393 = vmatpush.bf16.msra.mxu1 %v1215_v61 }
 0x166   :  { %v1232_v10 = vpack.c.bf16 %v1200_v6, %v1184_v63 }
 0x167   :  { %v1233_v16 = vpack.c.bf16 %v1201_v7, %v1185_v4  ;;  %2054 = vmatmul.msk.bf16.vlgmr.msra.gmra.mxu0 %vm447_vm0, %v3188_v32 }
 0x168   :  { %1406 = vmatpush.bf16.msra.mxu2 %v1232_v10  ;;  %2055 = vmatmul.msk.bf16.vlgmr.msra.gmra.mxu1 %vm447_vm0, %v3188_v32 }
 0x169   :  { %1420 = vmatpush.bf16.msra.mxu3 %v1233_v16 }
 0x16b   :  { %v3277_v16 = vpop.permute.xlu2 %1249 }
 0x16c   :  { %1407 = vmatpush.bf16.msra.mxu2 %v1216_v17 }
 0x16d   :  { %1421 = vmatpush.bf16.msra.mxu3 %v1217_v18 }
 0x16f   :  { %2056 = vmatmul.msk.bf16.vlgmr.msra.gmra.mxu2 %vm447_vm0, %v3188_v32 }
 0x170   :  { %2057 = vmatmul.msk.bf16.vlgmr.msra.gmra.mxu3 %vm447_vm0, %v3188_v32 }
 0x181   :  { %v1075_v13 = vpop.f32.mrf.mxu0 }
 0x182   :  { %v1094_v19 = vpop.f32.mrf.mxu1  ;;  %v1076_v42 = vadd.f32 %v1075_v13, %v3081_v53 }
 0x183   :  { %v1095_v45 = vadd.f32 %v1094_v19, %v3081_v53 }
 0x184   :  { %v1154_v55 = vmax.f32 %v1076_v42, 0.0 }
 0x185   :  { %v1155_v58 = vmax.f32 %v1095_v45, 0.0  ;;  %v3294_v45 = vld [vmem:[%s3426_s3] sm:$0xf]  ;;  %s2115_s3 = smov [#allocation2]  }
 0x186   :  { %s1991_s28 = sshll.u32 %s2115_s3, 4  ;;  %s1992_s28 = int_to_ptr.vmem [resolvable:$true] %s1991_s28 }
 0x189   :  { %v1113_v20 = vpop.f32.mrf.mxu2  ;;  %v1077_v22 = vpop.f32.mrf.mxu0 }
 0x18a   :  { %v1132_v47 = vpop.f32.mrf.mxu3  ;;  %v1096_v23 = vpop.f32.mrf.mxu1  ;;  %v1078_v36 = vadd.f32 %v1077_v22, %v3140_v60  ;;  %v1114_v2 = vadd.f32 %v1113_v20, %v3081_v53 }
 0x18b   :  { %v1097_v40 = vadd.f32 %v1096_v23, %v3140_v60  ;;  %v1133_v5 = vadd.f32 %v1132_v47, %v3081_v53 }
 0x18c   :  { %v1170_v14 = vmax.f32 %v1078_v36, 0.0  ;;  %v1156_v15 = vmax.f32 %v1114_v2, 0.0 }
 0x18d   :  { %v1171_v33 = vmax.f32 %v1097_v40, 0.0  ;;  %v1157_v53 = vmax.f32 %v1133_v5, 0.0 }
 0x18e   :  { %v1218_v62 = vpack.c.bf16 %v1170_v14, %v1154_v55 }
 0x18f   :  { %v1219_v3 = vpack.c.bf16 %v1171_v33, %v1155_v58 }
 0x191   :  { %v1115_v24 = vpop.f32.mrf.mxu2  ;;  %v1080_v26 = vpop.f32.mrf.mxu0 }
 0x192   :  { %v1134_v25 = vpop.f32.mrf.mxu3  ;;  %v1099_v28 = vpop.f32.mrf.mxu1  ;;  %v1081_v29 = vadd.f32 %v1080_v26, %v3079_v49  ;;  %v1116_v21 = vadd.f32 %v1115_v24, %v3140_v60 }
 0x193   :  { %v1100_v31 = vadd.f32 %v1099_v28, %v3079_v49  ;;  %v1135_v63 = vadd.f32 %v1134_v25, %v3140_v60 }
 0x194   :  { %v1186_v43 = vmax.f32 %v1081_v29, 0.0  ;;  %v1172_v8 = vmax.f32 %v1116_v21, 0.0 }
 0x195   :  { %v1187_v48 = vmax.f32 %v1100_v31, 0.0  ;;  %v1173_v10 = vmax.f32 %v1135_v63, 0.0 }
 0x196   :  { %v1220_v18 = vpack.c.bf16 %v1172_v8, %v1156_v15 }
 0x197   :  { %v1221_v46 = vpack.c.bf16 %v1173_v10, %v1157_v53 }
 0x199   :  { %v1118_v30 = vpop.f32.mrf.mxu2  ;;  %v1082_v35 = vpop.f32.mrf.mxu0 }
 0x19a   :  { %v1137_v34 = vpop.f32.mrf.mxu3  ;;  %v1083_v37 = vadd.f32 %v1082_v35, %v3117_v12  ;;  %v1101_v38 = vpop.f32.mrf.mxu1  ;;  %v1119_v27 = vadd.f32 %v1118_v30, %v3079_v49 }
 0x19b   :  { %v1102_v41 = vadd.f32 %v1101_v38, %v3117_v12  ;;  %v1138_v56 = vadd.f32 %v1137_v34, %v3079_v49 }
 0x19c   :  { %v1202_v44 = vmax.f32 %v1083_v37, 0.0  ;;  %v1188_v49 = vmax.f32 %v1119_v27, 0.0 }
 0x19d   :  { %v1203_v50 = vmax.f32 %v1102_v41, 0.0  ;;  %v1189_v6 = vmax.f32 %v1138_v56, 0.0 }
 0x19e   :  { %v1234_v52 = vpack.c.bf16 %v1202_v44, %v1186_v43 }
 0x19f   :  { %v1235_v54 = vpack.c.bf16 %v1203_v50, %v1187_v48 }
 0x1a0   :  { %1434 = vmatpush.bf16.msrb.mxu0 %v1234_v52 }
 0x1a1   :  { %v1120_v57 = vpop.f32.mrf.mxu2  ;;  %1448 = vmatpush.bf16.msrb.mxu1 %v1235_v54  ;;  %v1269_v61 = vpop.f32.mrf.mxu0 }
 0x1a2   :  { %v1121_v39 = vadd.f32 %v1120_v57, %v3117_v12  ;;  %v1139_v59 = vpop.f32.mrf.mxu3  ;;  %v1283_v1 = vpop.f32.mrf.mxu1  ;;  %v1270_v60 = vadd.f32 %v1269_v61, %v3263_v51 }
 0x1a3   :  { %v1140_v0 = vadd.f32 %v1139_v59, %v3117_v12  ;;  %v1284_v12 = vadd.f32 %v1283_v1, %v3263_v51 }
 0x1a4   :  { %v1204_v4 = vmax.f32 %v1121_v39, 0.0  ;;  %1435 = vmatpush.bf16.msrb.mxu0 %v1218_v62  ;;  %v1484_v20 = vmax.f32 %v1270_v60, 0.0 }
 0x1a5   :  { %v1205_v7 = vmax.f32 %v1140_v0, 0.0  ;;  %1449 = vmatpush.bf16.msrb.mxu1 %v1219_v3  ;;  %v1485_v23 = vmax.f32 %v1284_v12, 0.0 }
 0x1a6   :  { %v1236_v9 = vpack.c.bf16 %v1204_v4, %v1188_v49 }
 0x1a7   :  { %v1237_v11 = vpack.c.bf16 %v1205_v7, %v1189_v6  ;;  %2058 = vmatmul.msk.bf16.vlgmr.msrb.gmra.mxu0 %vm447_vm0, %v3188_v32 }
 0x1a8   :  { %1462 = vmatpush.bf16.msrb.mxu2 %v1236_v9  ;;  %2059 = vmatmul.msk.bf16.vlgmr.msrb.gmra.mxu1 %vm447_vm0, %v3188_v32 }
 0x1a9   :  { %1476 = vmatpush.bf16.msrb.mxu3 %v1237_v11  ;;  %v1297_v17 = vpop.f32.mrf.mxu2  ;;  %v1271_v19 = vpop.f32.mrf.mxu0 }
 0x1aa   :  { %v1311_v13 = vpop.f32.mrf.mxu3  ;;  %v1272_v47 = vadd.f32 %v1271_v19, %v3277_v16  ;;  %v1285_v22 = vpop.f32.mrf.mxu1  ;;  %v1298_v26 = vadd.f32 %v1297_v17, %v3263_v51 }
 0x1ab   :  { %v1286_v24 = vadd.f32 %v1285_v22, %v3277_v16  ;;  %v1312_v29 = vadd.f32 %v1311_v13, %v3263_v51 }
 0x1ac   :  { %1463 = vmatpush.bf16.msrb.mxu2 %v1220_v18  ;;  %v1500_v25 = vmax.f32 %v1272_v47, 0.0  ;;  %v1486_v35 = vmax.f32 %v1298_v26, 0.0 }
 0x1ad   :  { %1477 = vmatpush.bf16.msrb.mxu3 %v1221_v46  ;;  %v1501_v28 = vmax.f32 %v1286_v24, 0.0  ;;  %v1487_v40 = vmax.f32 %v1312_v29, 0.0 }
 0x1ae   :  { %v1516_v30 = vpack.c.bf16 %v1500_v25, %v1484_v20 }
 0x1af   :  { %2060 = vmatmul.msk.bf16.vlgmr.msrb.gmra.mxu2 %vm447_vm0, %v3188_v32  ;;  %v1517_v31 = vpack.c.bf16 %v1501_v28, %v1485_v23 }
 0x1b0   :  { %2061 = vmatmul.msk.bf16.vlgmr.msrb.gmra.mxu3 %vm447_vm0, %v3188_v32  ;;  %1550 = vmatpush.bf16.msra.mxu0 %v1516_v30 }
 0x1b1   :  { %v1299_v34 = vpop.f32.mrf.mxu2  ;;  %1563 = vmatpush.bf16.msra.mxu1 %v1517_v31  ;;  %v1325_v38 = vpop.f32.mrf.mxu0 }
 0x1b2   :  { %v1300_v36 = vadd.f32 %v1299_v34, %v3277_v16  ;;  %v1313_v37 = vpop.f32.mrf.mxu3  ;;  %v1339_v42 = vpop.f32.mrf.mxu1  ;;  %v1326_v50 = vadd.f32 %v1325_v38, %v3263_v51 }
 0x1b3   :  { %v1314_v41 = vadd.f32 %v1313_v37, %v3277_v16  ;;  %v1340_v14 = vadd.f32 %v1339_v42, %v3263_v51 }
 0x1b4   :  { %v1502_v43 = vmax.f32 %v1300_v36, 0.0  ;;  %v1488_v33 = vmax.f32 %v1326_v50, 0.0 }
 0x1b5   :  { %v1503_v44 = vmax.f32 %v1314_v41, 0.0  ;;  %v1489_v55 = vmax.f32 %v1340_v14, 0.0 }
 0x1b6   :  { %v1518_v32 = vpack.c.bf16 %v1502_v43, %v1486_v35 }
 0x1b7   :  { %v1519_v48 = vpack.c.bf16 %v1503_v44, %v1487_v40  ;;  %2062 = vmatmul.msk.bf16.vlgmr.msra.gmra.mxu0 %vm1539_vm1, %v3294_v45 }
 0x1b8   :  { %1576 = vmatpush.bf16.msra.mxu2 %v1518_v32  ;;  %2063 = vmatmul.msk.bf16.vlgmr.msra.gmra.mxu1 %vm1539_vm1, %v3294_v45 }
 0x1b9   :  { %1589 = vmatpush.bf16.msra.mxu3 %v1519_v48  ;;  %v1327_v52 = vpop.f32.mrf.mxu0  ;;  %v1353_v21 = vpop.f32.mrf.mxu2 }
 0x1ba   :  { %v1328_v27 = vadd.f32 %v1327_v52, %v3277_v16  ;;  %v1341_v54 = vpop.f32.mrf.mxu1  ;;  %v1367_v59 = vpop.f32.mrf.mxu3  ;;  %v1354_v62 = vadd.f32 %v1353_v21, %v3263_v51 }
 0x1bb   :  { %v1342_v56 = vadd.f32 %v1341_v54, %v3277_v16  ;;  %v1368_v63 = vadd.f32 %v1367_v59, %v3263_v51 }
 0x1bc   :  { %v1504_v57 = vmax.f32 %v1328_v27, 0.0  ;;  %v1490_v1 = vmax.f32 %v1354_v62, 0.0 }
 0x1bd   :  { %v1505_v58 = vmax.f32 %v1342_v56, 0.0  ;;  %v1491_v49 = vmax.f32 %v1368_v63, 0.0 }
 0x1be   :  { %v1520_v39 = vpack.c.bf16 %v1504_v57, %v1488_v33 }
 0x1bf   :  { %2064 = vmatmul.msk.bf16.vlgmr.msra.gmra.mxu2 %vm1539_vm1, %v3294_v45  ;;  %v1521_v61 = vpack.c.bf16 %v1505_v58, %v1489_v55 }
 0x1c0   :  { %2065 = vmatmul.msk.bf16.vlgmr.msra.gmra.mxu3 %vm1539_vm1, %v3294_v45  ;;  %1602 = vmatpush.bf16.msrb.mxu0 %v1520_v39  ;;  %v3344_v39 = vpop.permute.xlu0 %1536 }
 0x1c1   :  { %1615 = vmatpush.bf16.msrb.mxu1 %v1521_v61  ;;  %v1355_v0 = vpop.f32.mrf.mxu2 }
 0x1c2   :  { %v1356_v2 = vadd.f32 %v1355_v0, %v3277_v16  ;;  %v1369_v3 = vpop.f32.mrf.mxu3 }
 0x1c3   :  { %v1370_v4 = vadd.f32 %v1369_v3, %v3277_v16 }
 0x1c4   :  { %v1506_v5 = vmax.f32 %v1356_v2, 0.0 }
 0x1c5   :  { %v1507_v6 = vmax.f32 %v1370_v4, 0.0 }
 0x1c6   :  { %v1522_v7 = vpack.c.bf16 %v1506_v5, %v1490_v1 }
 0x1c7   :  { %2066 = vmatmul.msk.bf16.vlgmr.msrb.gmra.mxu0 %vm1539_vm1, %v3294_v45  ;;  %v1523_v8 = vpack.c.bf16 %v1507_v6, %v1491_v49 }
 0x1c8   :  { %2067 = vmatmul.msk.bf16.vlgmr.msrb.gmra.mxu1 %vm1539_vm1, %v3294_v45  ;;  %1628 = vmatpush.bf16.msrb.mxu2 %v1522_v7 }
 0x1c9   :  { %1641 = vmatpush.bf16.msrb.mxu3 %v1523_v8 }
 0x1cf   :  { %2068 = vmatmul.msk.bf16.vlgmr.msrb.gmra.mxu2 %vm1539_vm1, %v3294_v45 }
 0x1d0   :  { %2069 = vmatmul.msk.bf16.vlgmr.msrb.gmra.mxu3 %vm1539_vm1, %v3294_v45 }
 0x1e4   :  { %v1381_v9 = vpop.f32.mrf.mxu0 }
 0x1e5   :  { %v1395_v10 = vpop.f32.mrf.mxu1  ;;  %v1382_v11 = vadd.f32 %v1381_v9, %v3263_v51 }
 0x1e6   :  { %v1396_v60 = vadd.f32 %v1395_v10, %v3263_v51 }
 0x1e7   :  { %v1492_v12 = vmax.f32 %v1382_v11, 0.0 }
 0x1e8   :  { %v1493_v18 = vmax.f32 %v1396_v60, 0.0 }
 0x1ec   :  { %v1383_v15 = vpop.f32.mrf.mxu0 }
 0x1ed   :  { %v1384_v53 = vadd.f32 %v1383_v15, %v3277_v16  ;;  %v1397_v17 = vpop.f32.mrf.mxu1 }
 0x1ee   :  { %v1398_v13 = vadd.f32 %v1397_v17, %v3277_v16 }
 0x1ef   :  { %v1508_v19 = vmax.f32 %v1384_v53, 0.0 }
 0x1f0   :  { %v1509_v46 = vmax.f32 %v1398_v13, 0.0 }
 0x1f1   :  { %v1524_v20 = vpack.c.bf16 %v1508_v19, %v1492_v12 }
 0x1f2   :  { %v1409_v47 = vpop.f32.mrf.mxu2  ;;  %v1525_v22 = vpack.c.bf16 %v1509_v46, %v1493_v18 }
 0x1f3   :  { %v1423_v23 = vpop.f32.mrf.mxu3  ;;  %1654 = vmatpush.bf16.msra.mxu0 %v1524_v20  ;;  %v1410_v24 = vadd.f32 %v1409_v47, %v3263_v51 }
 0x1f4   :  { %1667 = vmatpush.bf16.msra.mxu1 %v1525_v22  ;;  %v1424_v25 = vadd.f32 %v1423_v23, %v3263_v51 }
 0x1f5   :  { %v1494_v28 = vmax.f32 %v1410_v24, 0.0  ;;  %v3360_v24 = vpop.permute.xlu1 %1794 }
 0x1f6   :  { %2070 = vmatmul.msk.bf16.vlgmr.msra.gmra.mxu0 %vm1539_vm1, %v3294_v45  ;;  %v1495_v31 = vmax.f32 %v1424_v25, 0.0 }
 0x1f7   :  { %2071 = vmatmul.msk.bf16.vlgmr.msra.gmra.mxu1 %vm1539_vm1, %v3294_v45 }
 0x1fa   :  { %v1411_v26 = vpop.f32.mrf.mxu2 }
 0x1fb   :  { %v1412_v29 = vadd.f32 %v1411_v26, %v3277_v16  ;;  %v1425_v30 = vpop.f32.mrf.mxu3 }
 0x1fc   :  { %v1426_v34 = vadd.f32 %v1425_v30, %v3277_v16 }
 0x1fd   :  { %v1510_v35 = vmax.f32 %v1412_v29, 0.0 }
 0x1fe   :  { %v1511_v36 = vmax.f32 %v1426_v34, 0.0 }
 0x1ff   :  { %v1526_v37 = vpack.c.bf16 %v1510_v35, %v1494_v28 }
 0x200   :  { %v1527_v38 = vpack.c.bf16 %v1511_v36, %v1495_v31 }
 0x201   :  { %1680 = vmatpush.bf16.msra.mxu2 %v1526_v37 }
 0x202   :  { %1693 = vmatpush.bf16.msra.mxu3 %v1527_v38 }
 0x204   :  { %2072 = vmatmul.msk.bf16.vlgmr.msra.gmra.mxu2 %vm1539_vm1, %v3294_v45 }
 0x205   :  { %2073 = vmatmul.msk.bf16.vlgmr.msra.gmra.mxu3 %vm1539_vm1, %v3294_v45 }
 0x224   :  { %v1437_v40 = vpop.f32.mrf.mxu0 }
 0x225   :  { %v1451_v41 = vpop.f32.mrf.mxu1  ;;  %v1438_v42 = vadd.f32 %v1437_v40, %v3263_v51 }
 0x226   :  { %v1452_v43 = vadd.f32 %v1451_v41, %v3263_v51 }
 0x227   :  { %v1496_v14 = vmax.f32 %v1438_v42, 0.0 }
 0x228   :  { %v1497_v33 = vmax.f32 %v1452_v43, 0.0 }
 0x22c   :  { %v1439_v44 = vpop.f32.mrf.mxu0 }
 0x22d   :  { %v1440_v32 = vadd.f32 %v1439_v44, %v3277_v16  ;;  %v1453_v48 = vpop.f32.mrf.mxu1 }
 0x22e   :  { %v1454_v50 = vadd.f32 %v1453_v48, %v3277_v16 }
 0x22f   :  { %v1512_v52 = vmax.f32 %v1440_v32, 0.0 }
 0x230   :  { %v1513_v27 = vmax.f32 %v1454_v50, 0.0 }
 0x231   :  { %v1528_v54 = vpack.c.bf16 %v1512_v52, %v1496_v14 }
 0x232   :  { %v1465_v55 = vpop.f32.mrf.mxu2  ;;  %v1529_v56 = vpack.c.bf16 %v1513_v27, %v1497_v33 }
 0x233   :  { %v1479_v57 = vpop.f32.mrf.mxu3  ;;  %1706 = vmatpush.bf16.msrb.mxu0 %v1528_v54  ;;  %v1466_v59 = vadd.f32 %v1465_v55, %v3263_v51 }
 0x234   :  { %1719 = vmatpush.bf16.msrb.mxu1 %v1529_v56  ;;  %v1552_v58 = vpop.f32.mrf.mxu0  ;;  %v1480_v61 = vadd.f32 %v1479_v57, %v3263_v51 }
 0x235   :  { %v1565_v21 = vpop.f32.mrf.mxu1  ;;  %v1553_v62 = vadd.f32 %v1552_v58, %v3344_v39  ;;  %v1498_v49 = vmax.f32 %v1466_v59, 0.0 }
 0x236   :  { %2074 = vmatmul.msk.bf16.vlgmr.msrb.gmra.mxu0 %vm1539_vm1, %v3294_v45  ;;  %v1566_v63 = vadd.f32 %v1565_v21, %v3344_v39  ;;  %v1499_v6 = vmax.f32 %v1480_v61, 0.0 }
 0x237   :  { %2075 = vmatmul.msk.bf16.vlgmr.msrb.gmra.mxu1 %vm1539_vm1, %v3294_v45  ;;  %v1751_v7 = vmax.f32 %v1553_v62, 0.0 }
 0x238   :  { %v1752_v8 = vmax.f32 %v1566_v63, 0.0 }
 0x23a   :  { %v1467_v0 = vpop.f32.mrf.mxu2  ;;  %v1767_v60 = vpack.c.bf16 %v1752_v8, %v1751_v7 }
 0x23b   :  { %v1468_v1 = vadd.f32 %v1467_v0, %v3277_v16  ;;  %v1481_v2 = vpop.f32.mrf.mxu3 }
 0x23c   :  { %v1482_v3 = vadd.f32 %v1481_v2, %v3277_v16  ;;  %v1554_v5 = vpop.f32.mrf.mxu0  ;;  %v1776_v13 = vunpack.c.h.bf16 %v1767_v60  ;;  %v1775_v34 = vunpack.c.l.bf16 %v1767_v60 }
 0x23d   :  { %v1514_v4 = vmax.f32 %v1468_v1, 0.0  ;;  %v1567_v10 = vpop.f32.mrf.mxu1 }
 0x23e   :  { %v1515_v9 = vmax.f32 %v1482_v3, 0.0  ;;  %v1798_v26 = vmul.f32 %v3360_v24, %v1776_v13  ;;  %v1797_v50 = vmul.f32 %v3360_v24, %v1775_v34 }
 0x23f   :  { %v1530_v11 = vpack.c.bf16 %v1514_v4, %v1498_v49 }
 0x240   :  { %v1531_v51 = vpack.c.bf16 %v1515_v9, %v1499_v6  ;;  %v1819_v41 = vrot.slane %v1798_v26, 4  ;;  %v1813_v58 = vrot.slane %v1797_v50, 4 }
 0x241   :  { %1732 = vmatpush.bf16.msrb.mxu2 %v1530_v11 }
 0x242   :  { %1745 = vmatpush.bf16.msrb.mxu3 %v1531_v51  ;;  %v1578_v15 = vpop.f32.mrf.mxu2  ;;  %v1820_v54 = vadd.f32 %v1819_v41, %v1798_v26  ;;  %v1814_v4 = vadd.f32 %v1813_v58, %v1797_v50 }
 0x243   :  { %v1579_v12 = vadd.f32 %v1578_v15, %v3344_v39  ;;  %v1591_v53 = vpop.f32.mrf.mxu3 }
 0x244   :  { %v1592_v17 = vadd.f32 %v1591_v53, %v3344_v39  ;;  %2076 = vmatmul.msk.bf16.vlgmr.msrb.gmra.mxu2 %vm1539_vm1, %v3294_v45  ;;  %v1604_v18 = vpop.f32.mrf.mxu0  ;;  %v1821_v0 = vrot.slane %v1820_v54, 2  ;;  %v1815_v15 = vrot.slane %v1814_v4, 2 }
 0x245   :  { %v1753_v16 = vmax.f32 %v1579_v12, 0.0  ;;  %2077 = vmatmul.msk.bf16.vlgmr.msrb.gmra.mxu3 %vm1539_vm1, %v3294_v45  ;;  %v1605_v46 = vadd.f32 %v1604_v18, %v3344_v39  ;;  %v1617_v20 = vpop.f32.mrf.mxu1 }
 0x246   :  { %v1754_v19 = vmax.f32 %v1592_v17, 0.0  ;;  %v1618_v47 = vadd.f32 %v1617_v20, %v3344_v39  ;;  %v1822_v8 = vadd.f32 %v1821_v0, %v1820_v54 }
 0x247   :  { %v1755_v23 = vmax.f32 %v1605_v46, 0.0 }
 0x248   :  { %v1768_v22 = vpack.c.bf16 %v1754_v19, %v1753_v16  ;;  %v1756_v25 = vmax.f32 %v1618_v47, 0.0  ;;  %v1823_v13 = vrot.slane %v1822_v8, 1 }
 0x24a   :  { %v1777_v28 = vunpack.c.l.bf16 %v1768_v22  ;;  %v1778_v29 = vunpack.c.h.bf16 %v1768_v22  ;;  %v1580_v30 = vpop.f32.mrf.mxu2  ;;  %v1769_v31 = vpack.c.bf16 %v1756_v25, %v1755_v23  ;;  %v1816_v22 = vadd.f32 %v1815_v15, %v1814_v4 }
 0x24b   :  { %v1593_v45 = vpop.f32.mrf.mxu3 }
 0x24c   :  { %v1799_v35 = vmul.f32 %v3360_v24, %v1777_v28  ;;  %v1800_v36 = vmul.f32 %v3360_v24, %v1778_v29  ;;  %v1779_v37 = vunpack.c.l.bf16 %v1769_v31  ;;  %v1780_v38 = vunpack.c.h.bf16 %v1769_v31  ;;  %v1606_v40 = vpop.f32.mrf.mxu0 }
 0x24d   :  { %v1619_v44 = vpop.f32.mrf.mxu1  ;;  %v1824_v29 = vadd.f32 %v1823_v13, %v1822_v8 }
 0x24e   :  { %v1825_v42 = vrot.slane %v1799_v35, 4  ;;  %v1831_v43 = vrot.slane %v1800_v36, 4  ;;  %v1801_v32 = vmul.f32 %v3360_v24, %v1779_v37  ;;  %v1802_v48 = vmul.f32 %v3360_v24, %v1780_v38 }
 0x250   :  { %v1826_v14 = vadd.f32 %v1825_v42, %v1799_v35  ;;  %v1832_v52 = vadd.f32 %v1831_v43, %v1800_v36  ;;  %v1837_v33 = vrot.slane %v1801_v32, 4  ;;  %v1843_v27 = vrot.slane %v1802_v48, 4  ;;  %v3372_v35 = vpop.permute.xlu2 %1912 }
 0x251   :  { %v1817_v36 = vrot.slane %v1816_v22, 1  ;;  %v1916_v42 = vadd.f32 %v3372_v35, %v1824_v29 }
 0x252   :  { %v1838_v55 = vadd.f32 %v1837_v33, %v1801_v32  ;;  %v1844_v56 = vadd.f32 %v1843_v27, %v1802_v48  ;;  %v1630_v57 = vpop.f32.mrf.mxu2  ;;  %v1827_v61 = vrot.slane %v1826_v14, 2  ;;  %v1833_v62 = vrot.slane %v1832_v52, 2 }
 0x253   :  { %v1631_v21 = vadd.f32 %v1630_v57, %v3344_v39  ;;  %v1643_v59 = vpop.f32.mrf.mxu3  ;;  %v1818_v50 = vadd.f32 %v1817_v36, %v1816_v22  ;;  %v1947_v54 = vrot.slane %v1916_v42, 7 }
 0x254   :  { %v1644_v63 = vadd.f32 %v1643_v59, %v3344_v39  ;;  %v1839_v2 = vrot.slane %v1838_v55, 2  ;;  %v1845_v3 = vrot.slane %v1844_v56, 2  ;;  %v1828_v5 = vadd.f32 %v1827_v61, %v1826_v14 }
 0x255   :  { %v1757_v1 = vmax.f32 %v1631_v21, 0.0  ;;  %v1834_v6 = vadd.f32 %v1833_v62, %v1832_v52  ;;  %v1915_v21 = vadd.f32 %v3372_v35, %v1818_v50 }
 0x256   :  { %v1758_v49 = vmax.f32 %v1644_v63, 0.0  ;;  %v1840_v9 = vadd.f32 %v1839_v2, %v1838_v55  ;;  %v1846_v10 = vadd.f32 %v1845_v3, %v1844_v56  ;;  %v1829_v53 = vrot.slane %v1828_v5, 1 }
 0x257   :  { %v1835_v17 = vrot.slane %v1834_v6, 1  ;;  %v1962_v63 = vsel %vm1961_vm2, %v1915_v21, %v1947_v54 }
 0x258   :  { %v1770_v7 = vpack.c.bf16 %v1758_v49, %v1757_v1  ;;  %v1841_v19 = vrot.slane %v1840_v9, 1  ;;  %v1847_v46 = vrot.slane %v1846_v10, 1  ;;  %v1830_v23 = vadd.f32 %v1829_v53, %v1828_v5 }
 0x259   :  { %v1836_v25 = vadd.f32 %v1835_v17, %v1834_v6 }
 0x25a   :  { %v1781_v11 = vunpack.c.l.bf16 %v1770_v7  ;;  %v1782_v51 = vunpack.c.h.bf16 %v1770_v7  ;;  %v1632_v60 = vpop.f32.mrf.mxu2  ;;  %v1842_v30 = vadd.f32 %v1841_v19, %v1840_v9  ;;  %v1848_v31 = vadd.f32 %v1847_v46, %v1846_v10 }
 0x25b   :  { %v1645_v12 = vpop.f32.mrf.mxu3  ;;  %v1917_v37 = vadd.f32 %v3372_v35, %v1830_v23  ;;  %v1918_v38 = vadd.f32 %v3372_v35, %v1836_v25 }
 0x25c   :  { %v1803_v16 = vmul.f32 %v3360_v24, %v1781_v11  ;;  %v1804_v18 = vmul.f32 %v3360_v24, %v1782_v51  ;;  %v1919_v43 = vadd.f32 %v3372_v35, %v1842_v30  ;;  %v1920_v44 = vadd.f32 %v3372_v35, %v1848_v31 }
 0x25d   :  { %v1948_v33 = vrot.slane %v1917_v37, 6  ;;  %v1949_v27 = vrot.slane %v1918_v38, 5 }
 0x25e   :  { %v1849_v20 = vrot.slane %v1803_v16, 4  ;;  %v1855_v47 = vrot.slane %v1804_v18, 4  ;;  %v1950_v57 = vrot.slane %v1919_v43, 4  ;;  %v1951_v58 = vrot.slane %v1920_v44, 3 }
 0x25f   :  { %v1964_v62 = vsel %vm1963_vm3, %v1948_v33, %v1949_v27 }
 0x260   :  { %v1850_v26 = vadd.f32 %v1849_v20, %v1803_v16  ;;  %v1856_v28 = vadd.f32 %v1855_v47, %v1804_v18  ;;  %v1968_v0 = vsel %vm1967_vm5, %v1950_v57, %v1951_v58  ;;  %v1966_v2 = vsel %vm1965_vm4, %v1962_v63, %v1964_v62 }
 0x262   :  { %v1851_v45 = vrot.slane %v1850_v26, 2  ;;  %v1857_v34 = vrot.slane %v1856_v28, 2 }
 0x264   :  { %v1852_v40 = vadd.f32 %v1851_v45, %v1850_v26  ;;  %v1858_v41 = vadd.f32 %v1857_v34, %v1856_v28 }
 0x266   :  { %v1853_v32 = vrot.slane %v1852_v40, 1  ;;  %v1859_v48 = vrot.slane %v1858_v41, 1 }
 0x268   :  { %v1854_v14 = vadd.f32 %v1853_v32, %v1852_v40  ;;  %v1860_v52 = vadd.f32 %v1859_v48, %v1858_v41 }
 0x26a   :  { %v1921_v55 = vadd.f32 %v3372_v35, %v1854_v14  ;;  %v1922_v56 = vadd.f32 %v3372_v35, %v1860_v52 }
 0x26c   :  { %v1952_v59 = vrot.slane %v1921_v55, 2  ;;  %v1953_v61 = vrot.slane %v1922_v56, 1 }
 0x26e   :  { %v1970_v1 = vsel %vm1969_vm6, %v1952_v59, %v1953_v61 }
 0x26f   :  { %v1972_v3 = vsel %vm1971_vm7, %v1968_v0, %v1970_v1 }
 0x270   :  { %v1974_v49 = vsel %vm1973_vm8, %v1966_v2, %v1972_v3 }
 0x271   :  { %1984 = vst [vmem:[#allocation2] sm:$0xff] %v1974_v49 }
 0x273   :  { %v1656_v4 = vpop.f32.mrf.mxu0 }
 0x274   :  { %v1657_v5 = vadd.f32 %v1656_v4, %v3344_v39  ;;  %v1669_v6 = vpop.f32.mrf.mxu1 }
 0x275   :  { %v1670_v7 = vadd.f32 %v1669_v6, %v3344_v39 }
 0x276   :  { %v1759_v8 = vmax.f32 %v1657_v5, 0.0 }
 0x277   :  { %v1760_v9 = vmax.f32 %v1670_v7, 0.0 }
 0x279   :  { %v1771_v10 = vpack.c.bf16 %v1760_v9, %v1759_v8 }
 0x27b   :  { %v1658_v11 = vpop.f32.mrf.mxu0  ;;  %v1784_v29 = vunpack.c.h.bf16 %v1771_v10  ;;  %v1783_v43 = vunpack.c.l.bf16 %v1771_v10 }
 0x27c   :  { %v1671_v51 = vpop.f32.mrf.mxu1 }
 0x27d   :  { %v1806_v40 = vmul.f32 %v3360_v24, %v1784_v29  ;;  %v1805_v52 = vmul.f32 %v3360_v24, %v1783_v43 }
 0x27f   :  { %v1867_v48 = vrot.slane %v1806_v40, 4  ;;  %v1861_v58 = vrot.slane %v1805_v52, 4 }
 0x281   :  { %v1868_v54 = vadd.f32 %v1867_v48, %v1806_v40  ;;  %v1862_v4 = vadd.f32 %v1861_v58, %v1805_v52 }
 0x283   :  { %v1869_v0 = vrot.slane %v1868_v54, 2 }
 0x285   :  { %v1870_v8 = vadd.f32 %v1869_v0, %v1868_v54 }
 0x287   :  { %v1682_v60 = vpop.f32.mrf.mxu2 }
 0x288   :  { %v1695_v15 = vpop.f32.mrf.mxu3  ;;  %v1683_v17 = vadd.f32 %v1682_v60, %v3344_v39 }
 0x289   :  { %v1696_v16 = vadd.f32 %v1695_v15, %v3344_v39  ;;  %v1863_v15 = vrot.slane %v1862_v4, 2 }
 0x28a   :  { %v1761_v18 = vmax.f32 %v1683_v17, 0.0 }
 0x28b   :  { %v1762_v13 = vmax.f32 %v1696_v16, 0.0 }
 0x28d   :  { %v1772_v46 = vpack.c.bf16 %v1762_v13, %v1761_v18  ;;  %v1871_v18 = vrot.slane %v1870_v8, 1 }
 0x28f   :  { %v1684_v12 = vpop.f32.mrf.mxu2  ;;  %v1785_v26 = vunpack.c.l.bf16 %v1772_v46  ;;  %v1786_v28 = vunpack.c.h.bf16 %v1772_v46 }
 0x290   :  { %v1697_v53 = vpop.f32.mrf.mxu3 }
 0x291   :  { %v1807_v36 = vmul.f32 %v3360_v24, %v1785_v26  ;;  %v1808_v37 = vmul.f32 %v3360_v24, %v1786_v28  ;;  %v1872_v28 = vadd.f32 %v1871_v18, %v1870_v8 }
 0x293   :  { %v1873_v44 = vrot.slane %v1807_v36, 4  ;;  %v1879_v32 = vrot.slane %v1808_v37, 4  ;;  %v1924_v40 = vadd.f32 %v3372_v35, %v1872_v28 }
 0x295   :  { %v1874_v33 = vadd.f32 %v1873_v44, %v1807_v36  ;;  %v1880_v27 = vadd.f32 %v1879_v32, %v1808_v37 }
 0x297   :  { %v1875_v61 = vrot.slane %v1874_v33, 2  ;;  %v1881_v62 = vrot.slane %v1880_v27, 2 }
 0x299   :  { %v1876_v5 = vadd.f32 %v1875_v61, %v1874_v33  ;;  %v1882_v6 = vadd.f32 %v1881_v62, %v1880_v27  ;;  %v1954_v33 = vrot.slane %v1924_v40, 7 }
 0x29b   :  { %v1877_v53 = vrot.slane %v1876_v5, 1  ;;  %v1883_v17 = vrot.slane %v1882_v6, 1 }
 0x2b3   :  { %v1708_v19 = vpop.f32.mrf.mxu0 }
 0x2b4   :  { %v1709_v20 = vadd.f32 %v1708_v19, %v3344_v39  ;;  %v1721_v47 = vpop.f32.mrf.mxu1 }
 0x2b5   :  { %v1722_v22 = vadd.f32 %v1721_v47, %v3344_v39  ;;  %v1864_v47 = vadd.f32 %v1863_v15, %v1862_v4 }
 0x2b6   :  { %v1763_v23 = vmax.f32 %v1709_v20, 0.0 }
 0x2b7   :  { %v1764_v25 = vmax.f32 %v1722_v22, 0.0  ;;  %v1878_v22 = vadd.f32 %v1877_v53, %v1876_v5 }
 0x2b9   :  { %v1773_v30 = vpack.c.bf16 %v1764_v25, %v1763_v23  ;;  %v1884_v23 = vadd.f32 %v1883_v17, %v1882_v6  ;;  %v1925_v36 = vadd.f32 %v3372_v35, %v1878_v22 }
 0x2bb   :  { %v1787_v31 = vunpack.c.l.bf16 %v1773_v30  ;;  %v1788_v45 = vunpack.c.h.bf16 %v1773_v30  ;;  %v1710_v34 = vpop.f32.mrf.mxu0 }
 0x2bc   :  { %v1723_v38 = vpop.f32.mrf.mxu1  ;;  %v1865_v34 = vrot.slane %v1864_v47, 1 }
 0x2bd   :  { %v1809_v41 = vmul.f32 %v3360_v24, %v1787_v31  ;;  %v1810_v42 = vmul.f32 %v3360_v24, %v1788_v45 }
 0x2be   :  { %v1866_v32 = vadd.f32 %v1865_v34, %v1864_v47 }
 0x2bf   :  { %v1885_v50 = vrot.slane %v1809_v41, 4  ;;  %v1891_v14 = vrot.slane %v1810_v42, 4 }
 0x2c1   :  { %v1886_v55 = vadd.f32 %v1885_v50, %v1809_v41  ;;  %v1892_v56 = vadd.f32 %v1891_v14, %v1810_v42  ;;  %v1955_v14 = vrot.slane %v1925_v36, 6 }
 0x2c3   :  { %v1887_v2 = vrot.slane %v1886_v55, 2  ;;  %v1893_v3 = vrot.slane %v1892_v56, 2 }
 0x2c5   :  { %v1888_v9 = vadd.f32 %v1887_v2, %v1886_v55  ;;  %v1894_v10 = vadd.f32 %v1893_v3, %v1892_v56 }
 0x2c7   :  { %v1734_v57 = vpop.f32.mrf.mxu2  ;;  %v1889_v13 = vrot.slane %v1888_v9, 1  ;;  %v1895_v19 = vrot.slane %v1894_v10, 1 }
 0x2c8   :  { %v1735_v21 = vadd.f32 %v1734_v57, %v3344_v39  ;;  %v1747_v59 = vpop.f32.mrf.mxu3  ;;  %v1923_v57 = vadd.f32 %v3372_v35, %v1866_v32 }
 0x2c9   :  { %v1748_v63 = vadd.f32 %v1747_v59, %v3344_v39  ;;  %v1890_v29 = vadd.f32 %v1889_v13, %v1888_v9  ;;  %v1896_v30 = vadd.f32 %v1895_v19, %v1894_v10 }
 0x2ca   :  { %v1765_v1 = vmax.f32 %v1735_v21, 0.0  ;;  %v1975_v61 = vsel %vm1961_vm2, %v1923_v57, %v1954_v33 }
 0x2cb   :  { %v1766_v49 = vmax.f32 %v1748_v63, 0.0  ;;  %v1927_v41 = vadd.f32 %v3372_v35, %v1890_v29  ;;  %v1928_v42 = vadd.f32 %v3372_v35, %v1896_v30 }
 0x2cd   :  { %v1774_v7 = vpack.c.bf16 %v1766_v49, %v1765_v1  ;;  %v1957_v55 = vrot.slane %v1927_v41, 4  ;;  %v1958_v56 = vrot.slane %v1928_v42, 3 }
 0x2cf   :  { %v1789_v11 = vunpack.c.l.bf16 %v1774_v7  ;;  %v1790_v51 = vunpack.c.h.bf16 %v1774_v7  ;;  %v1736_v60 = vpop.f32.mrf.mxu2  ;;  %v1978_v62 = vsel %vm1967_vm5, %v1957_v55, %v1958_v56 }
 0x2d0   :  { %v1749_v12 = vpop.f32.mrf.mxu3 }
 0x2d1   :  { %v1811_v39 = vmul.f32 %v3360_v24, %v1789_v11  ;;  %v1812_v16 = vmul.f32 %v3360_v24, %v1790_v51  ;;  %v1926_v24 = vadd.f32 %v3372_v35, %v1884_v23 }
 0x2d3   :  { %v1897_v46 = vrot.slane %v1811_v39, 4  ;;  %v1903_v20 = vrot.slane %v1812_v16, 4  ;;  %v1956_v52 = vrot.slane %v1926_v24, 5 }
 0x2d5   :  { %v1898_v25 = vadd.f32 %v1897_v46, %v1811_v39  ;;  %v1904_v26 = vadd.f32 %v1903_v20, %v1812_v16  ;;  %v1976_v59 = vsel %vm1963_vm3, %v1955_v14, %v1956_v52 }
 0x2d6   :  { %v1977_v0 = vsel %vm1965_vm4, %v1975_v61, %v1976_v59 }
 0x2d7   :  { %v1899_v31 = vrot.slane %v1898_v25, 2  ;;  %v1905_v45 = vrot.slane %v1904_v26, 2 }
 0x2d9   :  { %v1900_v37 = vadd.f32 %v1899_v31, %v1898_v25  ;;  %v1906_v38 = vadd.f32 %v1905_v45, %v1904_v26 }
 0x2db   :  { %v1901_v43 = vrot.slane %v1900_v37, 1  ;;  %v1907_v44 = vrot.slane %v1906_v38, 1 }
 0x2dd   :  { %v1902_v48 = vadd.f32 %v1901_v43, %v1900_v37  ;;  %v1908_v50 = vadd.f32 %v1907_v44, %v1906_v38 }
 0x2df   :  { %v1929_v27 = vadd.f32 %v3372_v35, %v1902_v48  ;;  %v1930_v54 = vadd.f32 %v3372_v35, %v1908_v50 }
 0x2e1   :  { %v1959_v58 = vrot.slane %v1929_v27, 2  ;;  %v1960_v21 = vrot.slane %v1930_v54, 1 }
 0x2e3   :  { %v1979_v63 = vsel %vm1969_vm6, %v1959_v58, %v1960_v21 }
 0x2e4   :  { %v1980_v35 = vsel %vm1971_vm7, %v1978_v62, %v1979_v63 }
 0x2e5   :  { %v1981_v1 = vsel %vm1973_vm8, %v1977_v0, %v1980_v35 }
 0x2e6   :  { %1985 = vst [vmem:[#allocation2 + $0x8] sm:$0xff] %v1981_v1 }
 0x2e7   :  { %1996 = dma.vmem_to_hbm [thread:$0]  %s1992_s28, 256, %s1994_s30, [#allocation3]  }
 0x2e8   :  { %2112 = dma.done.wait [#allocation3], 256  }
 0x2e9   :  { %2113 = vsyncadd [#allocation3], 4294967040 }
 0x2ea   :  { %2001 = vsyncpa [#allocation3], 1 }

</bundles_post_ra>
